<compile_context>
chip_gen: v7x
topology: tpu7x:2x2x1
jax: 0.10.0
libtpu: 0.0.40
codegen_flags: <defaults>
</compile_context>

<pallas_src>
import functools

import jax
import jax.numpy as jnp
import numpy as np
from jax.experimental import pallas as pl
from jax.experimental.pallas import tpu as pltpu


# --------------------------------------------------------------------------- #
# generation / VMEM sizing helpers
# --------------------------------------------------------------------------- #
def _tpu_generation():
    """Best-effort TPU generation from device_kind ('TPU v5 lite' -> 5, 'TPU v6e' -> 6, ...)."""
    try:
        kind = jax.devices()[0].device_kind.lower()
    except Exception:
        return 7
    for g in (7, 6, 5, 4, 3, 2):
        if f"v{g}" in kind or f"tpu{g}" in kind:
            return g
    return 7  # unknown: assume the most VMEM-constrained recent part


def _vmem_budget_bytes(gen):
    """Per-step planning budget (also used for vmem_limit_bytes) per TPU generation."""
    if gen >= 7:
        return 48 << 20          # v7x: 64 MiB physical per TensorCore
    if gen >= 5:
        return 96 << 20          # v5e/v5p/v6e: 128 MiB physical (scoped default 16/32 MiB)
    if gen == 4:
        return 64 << 20
    return 12 << 20              # very old parts: stay near the default scoped limit


def _step_vmem_bytes(bb, lq, lm, e, kv_chunk):
    """Rough per-grid-step VMEM footprint used to size the batch block BB."""
    f32b, bf16b = 4, 2
    ck = min(lm, kv_chunk)
    pipelined = 2 * (bb * lq * e * (2 * f32b + bf16b)        # tgt in + out + qpos (x2 buffers)
                     + bb * lm * e * 2 * bf16b               # mem + pos
                     + bb * (lq + lm) * f32b)                # key-padding masks
    weights = 2 * (9 * e * e * bf16b + 16 * e * f32b)
    scratch = bb * lq * e * f32b                             # ctx slab
    work = (bb * (lq + 2 * lm) * e * (f32b + bf16b)          # q/k/v projections (+ bf16 copies)
            + 4 * bb * lq * e * f32b                         # residual / LayerNorm temporaries
            + bb * lq * (ck * (f32b + bf16b) + lm * f32b))   # score chunk + hoisted key bias
    return pipelined + weights + scratch + work + work // 2  # 1.5x fudge for copies / spills


def _pick_block_b(B, lq, lm, e, kv_chunk, budget):
    """Largest batch block that fits the VMEM budget, keeping >=2 grid steps when B >= 2 so the
    'parallel' batch axis can still split across v7x's two TensorCores."""
    if B <= 1:
        return 1
    cap = min(32, max(1, -(-B // 2)))
    bb = 1
    for cand in range(1, cap + 1):
        if _step_vmem_bytes(cand, lq, lm, e, kv_chunk) <= (budget * 7) // 10:
            bb = cand
    return bb


# --------------------------------------------------------------------------- #
# kernel
# --------------------------------------------------------------------------- #
def _decoder_layer_kernel(
    tgt_ref, mem_ref, qpos_ref, pos_ref, tkpm_ref, mkpm_ref,
    w_ref, vec_ref, out_ref, ctx_ref,
    *, nhead, kv_chunk, bf16_exp, eps=1e-5,
):
    f32, bf16 = jnp.float32, jnp.bfloat16
    bb, lq, E = tgt_ref.shape
    hd = E // nhead
    n_q = bb * lq

    vec = vec_ref[...]                                     # (16, E) f32 per-feature rows

    def layer_norm(x, g, b):                               # x (N,E) f32, g/b (1,E)
        mu = jnp.mean(x, axis=-1, keepdims=True)
        xc = x - mu
        var = jnp.mean(xc * xc, axis=-1, keepdims=True)
        return xc * jax.lax.rsqrt(var + eps) * g + b

    def project(x_bf16, idx):
        # lane-dense (N,E)@(E,E) matmul, f32 accumulation; weight read at the use site
        return (jnp.dot(x_bf16, w_ref[idx], preferred_element_type=f32)
                + vec[idx:idx + 1, :])

    def mha(q_in3, k_in3, v_in3, base, key_bias_row):
        """base: slot of the q weight/bias; k/v/out follow at base+1..base+3.
        key_bias_row: (bb, 1, Lk) additive key-padding bias (0 or -1e30)."""
        lqq, lk = q_in3.shape[1], k_in3.shape[1]
        nq, nk = bb * lqq, bb * lk

        q3 = project(q_in3.reshape(nq, E).astype(bf16), base + 0) \
            .reshape(bb, lqq, E).astype(bf16)
        k3 = project(k_in3.reshape(nk, E).astype(bf16), base + 1) \
            .reshape(bb, lk, E).astype(bf16)
        v3 = project(v_in3.reshape(nk, E).astype(bf16), base + 2) \
            .reshape(bb, lk, E).astype(bf16)

        # hoist the key-bias broadcast out of the per-head / per-chunk loops
        key_bias = jnp.broadcast_to(key_bias_row, (bb, lqq, lk))

        n_chunks = -(-lk // kv_chunk)                      # static; flash-style key tiling
        for h in range(nhead):                             # static unroll over heads
            qh = q3[:, :, h * hd:(h + 1) * hd]
            m_i = jnp.full((bb, lqq, 1), -1e30, f32)
            l_i = jnp.zeros((bb, lqq, 1), f32)
            acc = jnp.zeros((bb, lqq, hd), f32)
            for c in range(n_chunks):                      # online softmax over key chunks
                c0 = c * kv_chunk
                c1 = min(lk, c0 + kv_chunk)
                kh = k3[:, c0:c1, h * hd:(h + 1) * hd]
                vh = v3[:, c0:c1, h * hd:(h + 1) * hd]
                s = jnp.einsum("bqd,bkd->bqk", qh, kh,
                               preferred_element_type=f32) + key_bias[:, :, c0:c1]
                m_new = jnp.maximum(m_i, jnp.max(s, axis=-1, keepdims=True))
                a = jnp.exp(m_i - m_new)
                if bf16_exp:        # v6e/v7x: bf16 EUP ~2x; row-sum stays f32
                    p = jnp.exp((s - m_new).astype(bf16))
                    p_sum = jnp.sum(p.astype(f32), axis=-1, keepdims=True)
                else:               # v5e and older: no bf16 EUP/VPU, stay f32
                    pf = jnp.exp(s - m_new)
                    p_sum = jnp.sum(pf, axis=-1, keepdims=True)
                    p = pf.astype(bf16)
                l_i = a * l_i + p_sum
                acc = a * acc + jnp.einsum("bqk,bkd->bqd", p, vh,
                                           preferred_element_type=f32)
                m_i = m_new
            # head "concat" folded into a (N,E) VMEM slab, read back once for the out-proj
            ctx_ref[:, :, h * hd:(h + 1) * hd] = acc * pl.reciprocal(l_i, approx=True)
        ctx = ctx_ref[...].reshape(nq, E).astype(bf16)
        return project(ctx, base + 3)                      # single K=E out-projection

    neg = jnp.float32(-1e30)                               # finite: avoids NaN rows
    tgt_key_bias = jnp.where(tkpm_ref[...] != 0.0, neg, jnp.float32(0.0))   # (bb,1,lq)
    mem_key_bias = jnp.where(mkpm_ref[...] != 0.0, neg, jnp.float32(0.0))   # (bb,1,lm)

    tgt = tgt_ref[...]                                     # f32 (residual / LayerNorm path)
    qpos = qpos_ref[...].astype(f32)                       # bf16 stream, upcast for f32 adds
    mem_bf = mem_ref[...]                                  # bf16 (matmul-only stream)

    # --- self attention: q = k = tgt + query_pos, value = tgt -----------------
    qk_in = tgt + qpos
    sa = mha(qk_in, qk_in, tgt, base=0, key_bias_row=tgt_key_bias)
    t1 = layer_norm(tgt.reshape(n_q, E) + sa, vec[9:10, :], vec[10:11, :])

    # --- cross attention: q = norm1-out + query_pos, k = mem + pos, v = mem ---
    q_c = t1.reshape(bb, lq, E) + qpos
    k_c = mem_bf.astype(f32) + pos_ref[...].astype(f32)
    ca = mha(q_c, k_c, mem_bf, base=4, key_bias_row=mem_key_bias)

    # --- linear1 (no activation in forward_post) + residual + norm2 -----------
    ff = project(ca.astype(bf16), 8)
    out = layer_norm(t1 + ff, vec[11:12, :], vec[12:13, :])
    out_ref[...] = out.reshape(bb, lq, E)


# --------------------------------------------------------------------------- #
# wrapper
# --------------------------------------------------------------------------- #
def transformer_decoder_layer_thin(tgt, memory, tgt_key_padding_mask,
                                   memory_key_padding_mask, pos, query_pos,
                                   params, nhead, kv_chunk=None):
    """PyTorch layout: tgt/query_pos (Lq, B, E); memory/pos (Lm, B, E);
    key-padding masks (B, L) bool with True == padded."""
    Lq, B, E = tgt.shape
    Lm = memory.shape[0]
    hd = E // nhead
    scale = 1.0 / float(np.sqrt(hd))

    gen = _tpu_generation()
    budget = _vmem_budget_bytes(gen)
    bf16_exp = gen >= 6                    # bf16 EUP exists on v6e/v7x only
    if kv_chunk is None:
        kv_chunk = 512                     # flash-style key tile (bounds VMEM on v7x)

    # batch-first copies; matmul-only streams are cast to bf16 here so both the extra HBM pass
    # and the kernel's pipeline buffers are half size.  tgt stays f32 (residual path).
    # TODO(synk): these transposes (and the final one) vanish if the caller stays batch-first.
    to_bf16 = lambda a: jnp.transpose(a, (1, 0, 2)).astype(jnp.bfloat16)
    tgt_b = jnp.transpose(tgt, (1, 0, 2)).astype(jnp.float32)
    mem_b, qpos_b, pos_b = to_bf16(memory), to_bf16(query_pos), to_bf16(pos)
    tkpm = tgt_key_padding_mask.astype(jnp.float32).reshape(B, 1, Lq)
    mkpm = memory_key_padding_mask.astype(jnp.float32).reshape(B, 1, Lm)

    # weight slab: pre-transposed (x @ W.T form), 1/sqrt(hd) folded into the q slots.
    # rows: 0..3 = self q/k/v/out, 4..7 = cross q/k/v/out, 8 = linear1
    wt = lambda w, s=1.0: (jnp.transpose(w).astype(jnp.float32) * s).astype(jnp.bfloat16)
    sw, sb = params["sa_in_w"], params["sa_in_b"]
    cw, cb = params["ca_in_w"], params["ca_in_b"]
    w_all = jnp.stack([
        wt(sw[:E], scale), wt(sw[E:2 * E]), wt(sw[2 * E:]), wt(params["sa_out_w"]),
        wt(cw[:E], scale), wt(cw[E:2 * E]), wt(cw[2 * E:]), wt(params["ca_out_w"]),
        wt(params["lin1_w"]),
    ])                                                             # (9, E, E) bf16

    zero_e = jnp.zeros((E,), jnp.float32)
    vecs = jnp.stack([
        sb[:E] * scale, sb[E:2 * E], sb[2 * E:], params["sa_out_b"],
        cb[:E] * scale, cb[E:2 * E], cb[2 * E:], params["ca_out_b"],
        params["lin1_b"], params["ln1_g"], params["ln1_b"],
        params["ln2_g"], params["ln2_b"], zero_e, zero_e, zero_e,
    ]).astype(jnp.float32)                                          # (16, E), sublane aligned

    BB = _pick_block_b(B, Lq, Lm, E, kv_chunk, budget)
    B_pad = -(-B // BB) * BB
    if B_pad != B:                          # pad the batch instead of a BB=1 perf cliff
        padb = lambda a: jnp.pad(a, ((0, B_pad - B),) + ((0, 0),) * (a.ndim - 1))
        tgt_b, mem_b, qpos_b, pos_b = padb(tgt_b), padb(mem_b), padb(qpos_b), padb(pos_b)
        tkpm, mkpm = padb(tkpm), padb(mkpm)
    grid = (B_pad // BB,)

    kernel = functools.partial(_decoder_layer_kernel, nhead=nhead,
                               kv_chunk=kv_chunk, bf16_exp=bf16_exp)

    seq = lambda L: pl.BlockSpec((BB, L, E), lambda b: (b, 0, 0))
    msk = lambda L: pl.BlockSpec((BB, 1, L), lambda b: (b, 0, 0))
    w_spec = pl.BlockSpec((9, E, E), lambda b: (0, 0, 0))
    v_spec = pl.BlockSpec((16, E), lambda b: (0, 0))

    out = pl.pallas_call(
        kernel,
        out_shape=jax.ShapeDtypeStruct((B_pad, Lq, E), jnp.float32),
        grid=grid,
        in_specs=[seq(Lq), seq(Lm), seq(Lq), seq(Lm), msk(Lq), msk(Lm), w_spec, v_spec],
        out_specs=pl.BlockSpec((BB, Lq, E), lambda b: (b, 0, 0)),
        scratch_shapes=[pltpu.VMEM((BB, Lq, E), jnp.float32)],      # shared ctx slab
        compiler_params=pltpu.CompilerParams(
            dimension_semantics=("parallel",),
            vmem_limit_bytes=(budget if gen >= 4 else None)),
    )(tgt_b, mem_b, qpos_b, pos_b, tkpm, mkpm, w_all, vecs)

    out = out[:B] if B_pad != B else out
    return jnp.transpose(out, (1, 0, 2))                            # back to (Lq, B, E)


# --------------------------------------------------------------------------- #
# pure-JAX reference (f32) of TransformerDecoderLayerThin.forward_post, eval mode
# --------------------------------------------------------------------------- #
def _reference_forward(tgt, memory, tkpm, mkpm, pos, query_pos, p, nhead, eps=1e-5):
    Lq, B, E = tgt.shape
    hd = E // nhead
    scale = 1.0 / np.sqrt(hd)

    def mha(q_in, k_in, v_in, in_w, in_b, out_w, out_b, kpm):
        Lq_, Lk_ = q_in.shape[0], k_in.shape[0]
        q = q_in @ in_w[:E].T + in_b[:E]
        k = k_in @ in_w[E:2 * E].T + in_b[E:2 * E]
        v = v_in @ in_w[2 * E:].T + in_b[2 * E:]
        q = q.transpose(1, 0, 2).reshape(B, Lq_, nhead, hd).transpose(0, 2, 1, 3)
        k = k.transpose(1, 0, 2).reshape(B, Lk_, nhead, hd).transpose(0, 2, 1, 3)
        v = v.transpose(1, 0, 2).reshape(B, Lk_, nhead, hd).transpose(0, 2, 1, 3)
        logits = jnp.einsum("bhqd,bhkd->bhqk", q, k) * scale
        logits = jnp.where(kpm[:, None, None, :], -jnp.inf, logits)
        w = jax.nn.softmax(logits, axis=-1)
        ctx = jnp.einsum("bhqk,bhkd->bhqd", w, v)
        ctx = ctx.transpose(0, 2, 1, 3).reshape(B, Lq_, E).transpose(1, 0, 2)
        return ctx @ out_w.T + out_b

    def ln(x, g, b):
        mu = jnp.mean(x, -1, keepdims=True)
        var = jnp.mean((x - mu) ** 2, -1, keepdims=True)
        return (x - mu) / jnp.sqrt(var + eps) * g + b

    qk = tgt + query_pos
    t = tgt + mha(qk, qk, tgt, p["sa_in_w"], p["sa_in_b"],
                  p["sa_out_w"], p["sa_out_b"], tkpm)
    t = ln(t, p["ln1_g"], p["ln1_b"])
    t2 = mha(t + query_pos, memory + pos, memory,
             p["ca_in_w"], p["ca_in_b"], p["ca_out_w"], p["ca_out_b"], mkpm)
    t2 = t2 @ p["lin1_w"].T + p["lin1_b"]
    t = ln(t + t2, p["ln2_g"], p["ln2_b"])
    return t


if __name__ == "__main__":
    d_model, nhead = 32, 4
    B, Lq, Lm = 2, 8, 16

    key = jax.random.PRNGKey(0)
    ks = jax.random.split(key, 20)
    nrm = lambda k, shape: 0.1 * jax.random.normal(k, shape, jnp.float32)

    params = {
        "sa_in_w":  nrm(ks[0], (3 * d_model, d_model)),
        "sa_in_b":  nrm(ks[1], (3 * d_model,)),
        "sa_out_w": nrm(ks[2], (d_model, d_model)),
        "sa_out_b": nrm(ks[3], (d_model,)),
        "ca_in_w":  nrm(ks[4], (3 * d_model, d_model)),
        "ca_in_b":  nrm(ks[5], (3 * d_model,)),
        "ca_out_w": nrm(ks[6], (d_model, d_model)),
        "ca_out_b": nrm(ks[7], (d_model,)),
        "lin1_w":   nrm(ks[8], (d_model, d_model)),   # linear1 is d_model -> d_model
        "lin1_b":   nrm(ks[9], (d_model,)),
        "ln1_g": jnp.ones((d_model,), jnp.float32),
        "ln1_b": jnp.zeros((d_model,), jnp.float32),
        "ln2_g": jnp.ones((d_model,), jnp.float32),
        "ln2_b": jnp.zeros((d_model,), jnp.float32),
    }

    tgt = jax.random.normal(ks[10], (Lq, B, d_model), jnp.float32)
    memory = jax.random.normal(ks[11], (Lm, B, d_model), jnp.float32)
    query_pos = jax.random.normal(ks[12], (Lq, B, d_model), jnp.float32)
    pos = jax.random.normal(ks[13], (Lm, B, d_model), jnp.float32)

    # key-padding masks: True == padded (no row fully padded)
    tgt_kpm = jnp.array([[False] * 7 + [True] * 1,
                         [False] * 6 + [True] * 2])
    mem_kpm = jnp.array([[False] * 13 + [True] * 3,
                         [False] * 11 + [True] * 5])

    run = jax.jit(lambda *a: transformer_decoder_layer_thin(
        *a, params=params, nhead=nhead))
    out = jax.block_until_ready(run(tgt, memory, tgt_kpm, mem_kpm, pos, query_pos))
    ref = _reference_forward(tgt, memory, tgt_kpm, mem_kpm, pos, query_pos, params, nhead)
    np.testing.assert_allclose(np.asarray(out), np.asarray(ref), rtol=3e-2, atol=3e-2)

    # exercise the flash-style multi-chunk key path (2 chunks of 8 keys over Lm=16)
    run_chunked = jax.jit(lambda *a: transformer_decoder_layer_thin(
        *a, params=params, nhead=nhead, kv_chunk=8))
    out2 = jax.block_until_ready(run_chunked(tgt, memory, tgt_kpm, mem_kpm, pos, query_pos))
    np.testing.assert_allclose(np.asarray(out2), np.asarray(ref), rtol=3e-2, atol=3e-2)

    # exercise BB>1 batching plus batch padding (B=3 -> BB=2, padded to 4)
    B3 = 3
    tgt3 = jax.random.normal(ks[14], (Lq, B3, d_model), jnp.float32)
    memory3 = jax.random.normal(ks[15], (Lm, B3, d_model), jnp.float32)
    query_pos3 = jax.random.normal(ks[16], (Lq, B3, d_model), jnp.float32)
    pos3 = jax.random.normal(ks[17], (Lm, B3, d_model), jnp.float32)
    tgt_kpm3 = jnp.array([[False] * 8,
                          [False] * 6 + [True] * 2,
                          [False] * 5 + [True] * 3])
    mem_kpm3 = jnp.array([[False] * 16,
                          [False] * 12 + [True] * 4,
                          [False] * 10 + [True] * 6])
    out3 = jax.block_until_ready(run(tgt3, memory3, tgt_kpm3, mem_kpm3, pos3, query_pos3))
    ref3 = _reference_forward(tgt3, memory3, tgt_kpm3, mem_kpm3, pos3, query_pos3,
                              params, nhead)
    np.testing.assert_allclose(np.asarray(out3), np.asarray(ref3), rtol=3e-2, atol=3e-2)

    print("KERNEL_OK")
</pallas_src>

<mosaic_0001>
module attributes {stable_mosaic.version = 11 : i64} {
  func.func @_decoder_layer_kernel(%arg0: i32, %arg1: memref<1x8x32xf32, #tpu.memory_space<vmem>>, %arg2: memref<1x16x32xbf16, #tpu.memory_space<vmem>>, %arg3: memref<1x8x32xbf16, #tpu.memory_space<vmem>>, %arg4: memref<1x16x32xbf16, #tpu.memory_space<vmem>>, %arg5: memref<1x1x8xf32, #tpu.memory_space<vmem>>, %arg6: memref<1x1x16xf32, #tpu.memory_space<vmem>>, %arg7: memref<9x32x32xbf16, #tpu.memory_space<vmem>>, %arg8: memref<16x32xf32, #tpu.memory_space<vmem>>, %arg9: memref<1x8x32xf32, #tpu.memory_space<vmem>>, %arg10: memref<1x8x32xf32, #tpu.memory_space<vmem>>) attributes {dimension_semantics = [#tpu.dimension_semantics<parallel>], iteration_bounds = array<i64: 2>, scalar_prefetch = 0 : i64, scratch_operands = 1 : i64, tpu.core_type = #tpu.core_type<tc>, window_params = [{transform_indices = @transform_0, window_bounds = array<i64: 1, 8, 32>}, {transform_indices = @transform_1, window_bounds = array<i64: 1, 16, 32>}, {transform_indices = @transform_2, window_bounds = array<i64: 1, 8, 32>}, {transform_indices = @transform_3, window_bounds = array<i64: 1, 16, 32>}, {transform_indices = @transform_4, window_bounds = array<i64: 1, 1, 8>}, {transform_indices = @transform_5, window_bounds = array<i64: 1, 1, 16>}, {pipeline_mode = #tpu.pipeline_mode<synchronous>, transform_indices = @transform_6, window_bounds = array<i64: 9, 32, 32>}, {pipeline_mode = #tpu.pipeline_mode<synchronous>, transform_indices = @transform_7, window_bounds = array<i64: 16, 32>}, {transform_indices = @transform_8, window_bounds = array<i64: 1, 8, 32>}]} {
    %c0 = arith.constant 0 : index
    %c0_0 = arith.constant 0 : index
    %0 = vector.load %arg8[%c0, %c0_0] : memref<16x32xf32, #tpu.memory_space<vmem>>, vector<16x32xf32>
    %c0_1 = arith.constant 0 : index
    %c0_2 = arith.constant 0 : index
    %c0_3 = arith.constant 0 : index
    %1 = vector.load %arg5[%c0_1, %c0_2, %c0_3] : memref<1x1x8xf32, #tpu.memory_space<vmem>>, vector<1x1x8xf32>
    %cst = arith.constant 0.000000e+00 : f32
    %2 = vector.broadcast %cst : f32 to vector<1x1x8xf32>
    %3 = arith.cmpf one, %1, %2 : vector<1x1x8xf32>
    %cst_4 = arith.constant -1.000000e+30 : f32
    %cst_5 = arith.constant 0.000000e+00 : f32
    %4 = vector.broadcast %cst_4 : f32 to vector<1x1x8xf32>
    %5 = vector.broadcast %cst_5 : f32 to vector<1x1x8xf32>
    %6 = arith.select %3, %4, %5 : vector<1x1x8xi1>, vector<1x1x8xf32>
    %c0_6 = arith.constant 0 : index
    %c0_7 = arith.constant 0 : index
    %c0_8 = arith.constant 0 : index
    %7 = vector.load %arg6[%c0_6, %c0_7, %c0_8] : memref<1x1x16xf32, #tpu.memory_space<vmem>>, vector<1x1x16xf32>
    %cst_9 = arith.constant 0.000000e+00 : f32
    %8 = vector.broadcast %cst_9 : f32 to vector<1x1x16xf32>
    %9 = arith.cmpf one, %7, %8 : vector<1x1x16xf32>
    %cst_10 = arith.constant -1.000000e+30 : f32
    %cst_11 = arith.constant 0.000000e+00 : f32
    %10 = vector.broadcast %cst_10 : f32 to vector<1x1x16xf32>
    %11 = vector.broadcast %cst_11 : f32 to vector<1x1x16xf32>
    %12 = arith.select %9, %10, %11 : vector<1x1x16xi1>, vector<1x1x16xf32>
    %c0_12 = arith.constant 0 : index
    %c0_13 = arith.constant 0 : index
    %c0_14 = arith.constant 0 : index
    %13 = vector.load %arg1[%c0_12, %c0_13, %c0_14] : memref<1x8x32xf32, #tpu.memory_space<vmem>>, vector<1x8x32xf32>
    %c0_15 = arith.constant 0 : index
    %c0_16 = arith.constant 0 : index
    %c0_17 = arith.constant 0 : index
    %14 = vector.load %arg3[%c0_15, %c0_16, %c0_17] : memref<1x8x32xbf16, #tpu.memory_space<vmem>>, vector<1x8x32xbf16>
    %15 = arith.extf %14 : vector<1x8x32xbf16> to vector<1x8x32xf32>
    %c0_18 = arith.constant 0 : index
    %c0_19 = arith.constant 0 : index
    %c0_20 = arith.constant 0 : index
    %16 = vector.load %arg2[%c0_18, %c0_19, %c0_20] : memref<1x16x32xbf16, #tpu.memory_space<vmem>>, vector<1x16x32xbf16>
    %17 = arith.addf %13, %15 : vector<1x8x32xf32>
    %18 = vector.shape_cast %17 : vector<1x8x32xf32> to vector<8x32xf32>
    %19 = arith.truncf %18 : vector<8x32xf32> to vector<8x32xbf16>
    %c0_21 = arith.constant 0 : index
    %c0_22 = arith.constant 0 : index
    %c0_23 = arith.constant 0 : index
    %20 = vector.load %arg7[%c0_21, %c0_22, %c0_23] : memref<9x32x32xbf16, #tpu.memory_space<vmem>>, vector<1x32x32xbf16>
    %21 = vector.shape_cast %20 : vector<1x32x32xbf16> to vector<32x32xbf16>
    %cst_24 = arith.constant dense<0.000000e+00> : vector<8x32xf32>
    %22 = tpu.matmul %19, %21, %cst_24 {dimension_numbers = #tpu.dot_dimension_numbers<[1], [0], [0], [1], [0, 0, 1, 1], [], []>} : vector<8x32xbf16>, vector<32x32xbf16>, vector<8x32xf32> -> vector<8x32xf32>
    %23 = vector.extract_strided_slice %0 {offsets = [0, 0], sizes = [1, 32], strides = [1, 1]} : vector<16x32xf32> to vector<1x32xf32>
    %24 = vector.broadcast %23 : vector<1x32xf32> to vector<8x32xf32>
    %25 = arith.addf %22, %24 : vector<8x32xf32>
    %26 = vector.shape_cast %25 : vector<8x32xf32> to vector<1x8x32xf32>
    %27 = arith.truncf %26 : vector<1x8x32xf32> to vector<1x8x32xbf16>
    %28 = vector.shape_cast %17 : vector<1x8x32xf32> to vector<8x32xf32>
    %29 = arith.truncf %28 : vector<8x32xf32> to vector<8x32xbf16>
    %c1 = arith.constant 1 : index
    %c0_25 = arith.constant 0 : index
    %c0_26 = arith.constant 0 : index
    %30 = vector.load %arg7[%c1, %c0_25, %c0_26] : memref<9x32x32xbf16, #tpu.memory_space<vmem>>, vector<1x32x32xbf16>
    %31 = vector.shape_cast %30 : vector<1x32x32xbf16> to vector<32x32xbf16>
    %cst_27 = arith.constant dense<0.000000e+00> : vector<8x32xf32>
    %32 = tpu.matmul %29, %31, %cst_27 {dimension_numbers = #tpu.dot_dimension_numbers<[1], [0], [0], [1], [0, 0, 1, 1], [], []>} : vector<8x32xbf16>, vector<32x32xbf16>, vector<8x32xf32> -> vector<8x32xf32>
    %33 = vector.extract_strided_slice %0 {offsets = [1, 0], sizes = [1, 32], strides = [1, 1]} : vector<16x32xf32> to vector<1x32xf32>
    %34 = vector.broadcast %33 : vector<1x32xf32> to vector<8x32xf32>
    %35 = arith.addf %32, %34 : vector<8x32xf32>
    %36 = vector.shape_cast %35 : vector<8x32xf32> to vector<1x8x32xf32>
    %37 = arith.truncf %36 : vector<1x8x32xf32> to vector<1x8x32xbf16>
    %38 = vector.shape_cast %13 : vector<1x8x32xf32> to vector<8x32xf32>
    %39 = arith.truncf %38 : vector<8x32xf32> to vector<8x32xbf16>
    %c2 = arith.constant 2 : index
    %c0_28 = arith.constant 0 : index
    %c0_29 = arith.constant 0 : index
    %40 = vector.load %arg7[%c2, %c0_28, %c0_29] : memref<9x32x32xbf16, #tpu.memory_space<vmem>>, vector<1x32x32xbf16>
    %41 = vector.shape_cast %40 : vector<1x32x32xbf16> to vector<32x32xbf16>
    %cst_30 = arith.constant dense<0.000000e+00> : vector<8x32xf32>
    %42 = tpu.matmul %39, %41, %cst_30 {dimension_numbers = #tpu.dot_dimension_numbers<[1], [0], [0], [1], [0, 0, 1, 1], [], []>} : vector<8x32xbf16>, vector<32x32xbf16>, vector<8x32xf32> -> vector<8x32xf32>
    %43 = vector.extract_strided_slice %0 {offsets = [2, 0], sizes = [1, 32], strides = [1, 1]} : vector<16x32xf32> to vector<1x32xf32>
    %44 = vector.broadcast %43 : vector<1x32xf32> to vector<8x32xf32>
    %45 = arith.addf %42, %44 : vector<8x32xf32>
    %46 = vector.shape_cast %45 : vector<8x32xf32> to vector<1x8x32xf32>
    %47 = arith.truncf %46 : vector<1x8x32xf32> to vector<1x8x32xbf16>
    %48 = vector.shape_cast %6 : vector<1x1x8xf32> to vector<1x1x8xf32>
    %49 = vector.broadcast %48 : vector<1x1x8xf32> to vector<1x8x8xf32>
    %50 = vector.extract_strided_slice %27 {offsets = [0, 0, 0], sizes = [1, 8, 8], strides = [1, 1, 1]} : vector<1x8x32xbf16> to vector<1x8x8xbf16>
    %cst_31 = arith.constant -1.000000e+30 : f32
    %51 = vector.broadcast %cst_31 : f32 to vector<1x8x1xf32>
    %cst_32 = arith.constant 0.000000e+00 : f32
    %52 = vector.broadcast %cst_32 : f32 to vector<1x8x1xf32>
    %cst_33 = arith.constant 0.000000e+00 : f32
    %53 = vector.broadcast %cst_33 : f32 to vector<1x8x8xf32>
    %54 = vector.extract_strided_slice %37 {offsets = [0, 0, 0], sizes = [1, 8, 8], strides = [1, 1, 1]} : vector<1x8x32xbf16> to vector<1x8x8xbf16>
    %55 = vector.extract_strided_slice %47 {offsets = [0, 0, 0], sizes = [1, 8, 8], strides = [1, 1, 1]} : vector<1x8x32xbf16> to vector<1x8x8xbf16>
    "tpu.trace_start"() <{level = 10 : i32, message = "bqd,bkd->bqk"}> : () -> ()
    %cst_34 = arith.constant dense<0.000000e+00> : vector<1x8x8xf32>
    %56 = tpu.matmul %50, %54, %cst_34 {dimension_numbers = #tpu.dot_dimension_numbers<[2], [2], [1], [1], [0, 0, 0, 1, 1, 1], [0], [0]>} : vector<1x8x8xbf16>, vector<1x8x8xbf16>, vector<1x8x8xf32> -> vector<1x8x8xf32>
    "tpu.trace_stop"() : () -> ()
    %57 = arith.addf %56, %49 : vector<1x8x8xf32>
    %cst_35 = arith.constant dense<0xFF800000> : vector<1x8xf32>
    %58 = vector.multi_reduction <maximumf>, %57, %cst_35 [2] : vector<1x8x8xf32> to vector<1x8xf32>
    %59 = vector.shape_cast %58 : vector<1x8xf32> to vector<1x8x1xf32>
    %60 = arith.maximumf %51, %59 : vector<1x8x1xf32>
    %61 = arith.subf %51, %60 : vector<1x8x1xf32>
    %62 = math.exp %61 : vector<1x8x1xf32>
    %63 = vector.broadcast %60 : vector<1x8x1xf32> to vector<1x8x8xf32>
    %64 = arith.subf %57, %63 : vector<1x8x8xf32>
    %65 = arith.truncf %64 : vector<1x8x8xf32> to vector<1x8x8xbf16>
    %66 = math.exp %65 : vector<1x8x8xbf16>
    %67 = arith.extf %66 : vector<1x8x8xbf16> to vector<1x8x8xf32>
    %cst_36 = arith.constant dense<0.000000e+00> : vector<1x8xf32>
    %68 = vector.multi_reduction <add>, %67, %cst_36 [2] : vector<1x8x8xf32> to vector<1x8xf32>
    %69 = vector.shape_cast %68 : vector<1x8xf32> to vector<1x8x1xf32>
    %70 = arith.mulf %62, %52 : vector<1x8x1xf32>
    %71 = arith.addf %70, %69 : vector<1x8x1xf32>
    %72 = vector.broadcast %62 : vector<1x8x1xf32> to vector<1x8x8xf32>
    %73 = arith.mulf %72, %53 : vector<1x8x8xf32>
    "tpu.trace_start"() <{level = 10 : i32, message = "bqk,bkd->bqd"}> : () -> ()
    %cst_37 = arith.constant dense<0.000000e+00> : vector<1x8x8xf32>
    %74 = tpu.matmul %66, %55, %cst_37 {dimension_numbers = #tpu.dot_dimension_numbers<[2], [1], [1], [2], [0, 0, 0, 1, 1, 2], [0], [0]>} : vector<1x8x8xbf16>, vector<1x8x8xbf16>, vector<1x8x8xf32> -> vector<1x8x8xf32>
    "tpu.trace_stop"() : () -> ()
    %75 = arith.addf %73, %74 : vector<1x8x8xf32>
    %76 = tpu.reciprocal %71 {approx = true} : vector<1x8x1xf32> -> vector<1x8x1xf32>
    %77 = vector.broadcast %76 : vector<1x8x1xf32> to vector<1x8x8xf32>
    %78 = arith.mulf %75, %77 : vector<1x8x8xf32>
    %c0_38 = arith.constant 0 : index
    %c0_39 = arith.constant 0 : index
    %c0_40 = arith.constant 0 : index
    %79 = vector.load %arg10[%c0_38, %c0_39, %c0_40] : memref<1x8x32xf32, #tpu.memory_space<vmem>>, vector<1x8x8xf32>
    tpu.vector_store %arg10[%c0_38, %c0_39, %c0_40], %78 {strides = array<i32>} : memref<1x8x32xf32, #tpu.memory_space<vmem>>, vector<1x8x8xf32>,
    %80 = vector.extract_strided_slice %27 {offsets = [0, 0, 8], sizes = [1, 8, 8], strides = [1, 1, 1]} : vector<1x8x32xbf16> to vector<1x8x8xbf16>
    %cst_41 = arith.constant -1.000000e+30 : f32
    %81 = vector.broadcast %cst_41 : f32 to vector<1x8x1xf32>
    %cst_42 = arith.constant 0.000000e+00 : f32
    %82 = vector.broadcast %cst_42 : f32 to vector<1x8x1xf32>
    %cst_43 = arith.constant 0.000000e+00 : f32
    %83 = vector.broadcast %cst_43 : f32 to vector<1x8x8xf32>
    %84 = vector.extract_strided_slice %37 {offsets = [0, 0, 8], sizes = [1, 8, 8], strides = [1, 1, 1]} : vector<1x8x32xbf16> to vector<1x8x8xbf16>
    %85 = vector.extract_strided_slice %47 {offsets = [0, 0, 8], sizes = [1, 8, 8], strides = [1, 1, 1]} : vector<1x8x32xbf16> to vector<1x8x8xbf16>
    "tpu.trace_start"() <{level = 10 : i32, message = "bqd,bkd->bqk"}> : () -> ()
    %cst_44 = arith.constant dense<0.000000e+00> : vector<1x8x8xf32>
    %86 = tpu.matmul %80, %84, %cst_44 {dimension_numbers = #tpu.dot_dimension_numbers<[2], [2], [1], [1], [0, 0, 0, 1, 1, 1], [0], [0]>} : vector<1x8x8xbf16>, vector<1x8x8xbf16>, vector<1x8x8xf32> -> vector<1x8x8xf32>
    "tpu.trace_stop"() : () -> ()
    %87 = arith.addf %86, %49 : vector<1x8x8xf32>
    %cst_45 = arith.constant dense<0xFF800000> : vector<1x8xf32>
    %88 = vector.multi_reduction <maximumf>, %87, %cst_45 [2] : vector<1x8x8xf32> to vector<1x8xf32>
    %89 = vector.shape_cast %88 : vector<1x8xf32> to vector<1x8x1xf32>
    %90 = arith.maximumf %81, %89 : vector<1x8x1xf32>
    %91 = arith.subf %81, %90 : vector<1x8x1xf32>
    %92 = math.exp %91 : vector<1x8x1xf32>
    %93 = vector.broadcast %90 : vector<1x8x1xf32> to vector<1x8x8xf32>
    %94 = arith.subf %87, %93 : vector<1x8x8xf32>
    %95 = arith.truncf %94 : vector<1x8x8xf32> to vector<1x8x8xbf16>
    %96 = math.exp %95 : vector<1x8x8xbf16>
    %97 = arith.extf %96 : vector<1x8x8xbf16> to vector<1x8x8xf32>
    %cst_46 = arith.constant dense<0.000000e+00> : vector<1x8xf32>
    %98 = vector.multi_reduction <add>, %97, %cst_46 [2] : vector<1x8x8xf32> to vector<1x8xf32>
    %99 = vector.shape_cast %98 : vector<1x8xf32> to vector<1x8x1xf32>
    %100 = arith.mulf %92, %82 : vector<1x8x1xf32>
    %101 = arith.addf %100, %99 : vector<1x8x1xf32>
    %102 = vector.broadcast %92 : vector<1x8x1xf32> to vector<1x8x8xf32>
    %103 = arith.mulf %102, %83 : vector<1x8x8xf32>
    "tpu.trace_start"() <{level = 10 : i32, message = "bqk,bkd->bqd"}> : () -> ()
    %cst_47 = arith.constant dense<0.000000e+00> : vector<1x8x8xf32>
    %104 = tpu.matmul %96, %85, %cst_47 {dimension_numbers = #tpu.dot_dimension_numbers<[2], [1], [1], [2], [0, 0, 0, 1, 1, 2], [0], [0]>} : vector<1x8x8xbf16>, vector<1x8x8xbf16>, vector<1x8x8xf32> -> vector<1x8x8xf32>
    "tpu.trace_stop"() : () -> ()
    %105 = arith.addf %103, %104 : vector<1x8x8xf32>
    %106 = tpu.reciprocal %101 {approx = true} : vector<1x8x1xf32> -> vector<1x8x1xf32>
    %107 = vector.broadcast %106 : vector<1x8x1xf32> to vector<1x8x8xf32>
    %108 = arith.mulf %105, %107 : vector<1x8x8xf32>
    %c0_48 = arith.constant 0 : index
    %c0_49 = arith.constant 0 : index
    %c8 = arith.constant 8 : index
    %109 = vector.load %arg10[%c0_48, %c0_49, %c8] : memref<1x8x32xf32, #tpu.memory_space<vmem>>, vector<1x8x8xf32>
    tpu.vector_store %arg10[%c0_48, %c0_49, %c8], %108 {strides = array<i32>} : memref<1x8x32xf32, #tpu.memory_space<vmem>>, vector<1x8x8xf32>,
    %110 = vector.extract_strided_slice %27 {offsets = [0, 0, 16], sizes = [1, 8, 8], strides = [1, 1, 1]} : vector<1x8x32xbf16> to vector<1x8x8xbf16>
    %cst_50 = arith.constant -1.000000e+30 : f32
    %111 = vector.broadcast %cst_50 : f32 to vector<1x8x1xf32>
    %cst_51 = arith.constant 0.000000e+00 : f32
    %112 = vector.broadcast %cst_51 : f32 to vector<1x8x1xf32>
    %cst_52 = arith.constant 0.000000e+00 : f32
    %113 = vector.broadcast %cst_52 : f32 to vector<1x8x8xf32>
    %114 = vector.extract_strided_slice %37 {offsets = [0, 0, 16], sizes = [1, 8, 8], strides = [1, 1, 1]} : vector<1x8x32xbf16> to vector<1x8x8xbf16>
    %115 = vector.extract_strided_slice %47 {offsets = [0, 0, 16], sizes = [1, 8, 8], strides = [1, 1, 1]} : vector<1x8x32xbf16> to vector<1x8x8xbf16>
    "tpu.trace_start"() <{level = 10 : i32, message = "bqd,bkd->bqk"}> : () -> ()
    %cst_53 = arith.constant dense<0.000000e+00> : vector<1x8x8xf32>
    %116 = tpu.matmul %110, %114, %cst_53 {dimension_numbers = #tpu.dot_dimension_numbers<[2], [2], [1], [1], [0, 0, 0, 1, 1, 1], [0], [0]>} : vector<1x8x8xbf16>, vector<1x8x8xbf16>, vector<1x8x8xf32> -> vector<1x8x8xf32>
    "tpu.trace_stop"() : () -> ()
    %117 = arith.addf %116, %49 : vector<1x8x8xf32>
    %cst_54 = arith.constant dense<0xFF800000> : vector<1x8xf32>
    %118 = vector.multi_reduction <maximumf>, %117, %cst_54 [2] : vector<1x8x8xf32> to vector<1x8xf32>
    %119 = vector.shape_cast %118 : vector<1x8xf32> to vector<1x8x1xf32>
    %120 = arith.maximumf %111, %119 : vector<1x8x1xf32>
    %121 = arith.subf %111, %120 : vector<1x8x1xf32>
    %122 = math.exp %121 : vector<1x8x1xf32>
    %123 = vector.broadcast %120 : vector<1x8x1xf32> to vector<1x8x8xf32>
    %124 = arith.subf %117, %123 : vector<1x8x8xf32>
    %125 = arith.truncf %124 : vector<1x8x8xf32> to vector<1x8x8xbf16>
    %126 = math.exp %125 : vector<1x8x8xbf16>
    %127 = arith.extf %126 : vector<1x8x8xbf16> to vector<1x8x8xf32>
    %cst_55 = arith.constant dense<0.000000e+00> : vector<1x8xf32>
    %128 = vector.multi_reduction <add>, %127, %cst_55 [2] : vector<1x8x8xf32> to vector<1x8xf32>
    %129 = vector.shape_cast %128 : vector<1x8xf32> to vector<1x8x1xf32>
    %130 = arith.mulf %122, %112 : vector<1x8x1xf32>
    %131 = arith.addf %130, %129 : vector<1x8x1xf32>
    %132 = vector.broadcast %122 : vector<1x8x1xf32> to vector<1x8x8xf32>
    %133 = arith.mulf %132, %113 : vector<1x8x8xf32>
    "tpu.trace_start"() <{level = 10 : i32, message = "bqk,bkd->bqd"}> : () -> ()
    %cst_56 = arith.constant dense<0.000000e+00> : vector<1x8x8xf32>
    %134 = tpu.matmul %126, %115, %cst_56 {dimension_numbers = #tpu.dot_dimension_numbers<[2], [1], [1], [2], [0, 0, 0, 1, 1, 2], [0], [0]>} : vector<1x8x8xbf16>, vector<1x8x8xbf16>, vector<1x8x8xf32> -> vector<1x8x8xf32>
    "tpu.trace_stop"() : () -> ()
    %135 = arith.addf %133, %134 : vector<1x8x8xf32>
    %136 = tpu.reciprocal %131 {approx = true} : vector<1x8x1xf32> -> vector<1x8x1xf32>
    %137 = vector.broadcast %136 : vector<1x8x1xf32> to vector<1x8x8xf32>
    %138 = arith.mulf %135, %137 : vector<1x8x8xf32>
    %c0_57 = arith.constant 0 : index
    %c0_58 = arith.constant 0 : index
    %c16 = arith.constant 16 : index
    %139 = vector.load %arg10[%c0_57, %c0_58, %c16] : memref<1x8x32xf32, #tpu.memory_space<vmem>>, vector<1x8x8xf32>
    tpu.vector_store %arg10[%c0_57, %c0_58, %c16], %138 {strides = array<i32>} : memref<1x8x32xf32, #tpu.memory_space<vmem>>, vector<1x8x8xf32>,
    %140 = vector.extract_strided_slice %27 {offsets = [0, 0, 24], sizes = [1, 8, 8], strides = [1, 1, 1]} : vector<1x8x32xbf16> to vector<1x8x8xbf16>
    %cst_59 = arith.constant -1.000000e+30 : f32
    %141 = vector.broadcast %cst_59 : f32 to vector<1x8x1xf32>
    %cst_60 = arith.constant 0.000000e+00 : f32
    %142 = vector.broadcast %cst_60 : f32 to vector<1x8x1xf32>
    %cst_61 = arith.constant 0.000000e+00 : f32
    %143 = vector.broadcast %cst_61 : f32 to vector<1x8x8xf32>
    %144 = vector.extract_strided_slice %37 {offsets = [0, 0, 24], sizes = [1, 8, 8], strides = [1, 1, 1]} : vector<1x8x32xbf16> to vector<1x8x8xbf16>
    %145 = vector.extract_strided_slice %47 {offsets = [0, 0, 24], sizes = [1, 8, 8], strides = [1, 1, 1]} : vector<1x8x32xbf16> to vector<1x8x8xbf16>
    "tpu.trace_start"() <{level = 10 : i32, message = "bqd,bkd->bqk"}> : () -> ()
    %cst_62 = arith.constant dense<0.000000e+00> : vector<1x8x8xf32>
    %146 = tpu.matmul %140, %144, %cst_62 {dimension_numbers = #tpu.dot_dimension_numbers<[2], [2], [1], [1], [0, 0, 0, 1, 1, 1], [0], [0]>} : vector<1x8x8xbf16>, vector<1x8x8xbf16>, vector<1x8x8xf32> -> vector<1x8x8xf32>
    "tpu.trace_stop"() : () -> ()
    %147 = arith.addf %146, %49 : vector<1x8x8xf32>
    %cst_63 = arith.constant dense<0xFF800000> : vector<1x8xf32>
    %148 = vector.multi_reduction <maximumf>, %147, %cst_63 [2] : vector<1x8x8xf32> to vector<1x8xf32>
    %149 = vector.shape_cast %148 : vector<1x8xf32> to vector<1x8x1xf32>
    %150 = arith.maximumf %141, %149 : vector<1x8x1xf32>
    %151 = arith.subf %141, %150 : vector<1x8x1xf32>
    %152 = math.exp %151 : vector<1x8x1xf32>
    %153 = vector.broadcast %150 : vector<1x8x1xf32> to vector<1x8x8xf32>
    %154 = arith.subf %147, %153 : vector<1x8x8xf32>
    %155 = arith.truncf %154 : vector<1x8x8xf32> to vector<1x8x8xbf16>
    %156 = math.exp %155 : vector<1x8x8xbf16>
    %157 = arith.extf %156 : vector<1x8x8xbf16> to vector<1x8x8xf32>
    %cst_64 = arith.constant dense<0.000000e+00> : vector<1x8xf32>
    %158 = vector.multi_reduction <add>, %157, %cst_64 [2] : vector<1x8x8xf32> to vector<1x8xf32>
    %159 = vector.shape_cast %158 : vector<1x8xf32> to vector<1x8x1xf32>
    %160 = arith.mulf %152, %142 : vector<1x8x1xf32>
    %161 = arith.addf %160, %159 : vector<1x8x1xf32>
    %162 = vector.broadcast %152 : vector<1x8x1xf32> to vector<1x8x8xf32>
    %163 = arith.mulf %162, %143 : vector<1x8x8xf32>
    "tpu.trace_start"() <{level = 10 : i32, message = "bqk,bkd->bqd"}> : () -> ()
    %cst_65 = arith.constant dense<0.000000e+00> : vector<1x8x8xf32>
    %164 = tpu.matmul %156, %145, %cst_65 {dimension_numbers = #tpu.dot_dimension_numbers<[2], [1], [1], [2], [0, 0, 0, 1, 1, 2], [0], [0]>} : vector<1x8x8xbf16>, vector<1x8x8xbf16>, vector<1x8x8xf32> -> vector<1x8x8xf32>
    "tpu.trace_stop"() : () -> ()
    %165 = arith.addf %163, %164 : vector<1x8x8xf32>
    %166 = tpu.reciprocal %161 {approx = true} : vector<1x8x1xf32> -> vector<1x8x1xf32>
    %167 = vector.broadcast %166 : vector<1x8x1xf32> to vector<1x8x8xf32>
    %168 = arith.mulf %165, %167 : vector<1x8x8xf32>
    %c0_66 = arith.constant 0 : index
    %c0_67 = arith.constant 0 : index
    %c24 = arith.constant 24 : index
    %169 = vector.load %arg10[%c0_66, %c0_67, %c24] : memref<1x8x32xf32, #tpu.memory_space<vmem>>, vector<1x8x8xf32>
    tpu.vector_store %arg10[%c0_66, %c0_67, %c24], %168 {strides = array<i32>} : memref<1x8x32xf32, #tpu.memory_space<vmem>>, vector<1x8x8xf32>,
    %c0_68 = arith.constant 0 : index
    %c0_69 = arith.constant 0 : index
    %c0_70 = arith.constant 0 : index
    %170 = vector.load %arg10[%c0_68, %c0_69, %c0_70] : memref<1x8x32xf32, #tpu.memory_space<vmem>>, vector<1x8x32xf32>
    %171 = vector.shape_cast %170 : vector<1x8x32xf32> to vector<8x32xf32>
    %172 = arith.truncf %171 : vector<8x32xf32> to vector<8x32xbf16>
    %c3 = arith.constant 3 : index
    %c0_71 = arith.constant 0 : index
    %c0_72 = arith.constant 0 : index
    %173 = vector.load %arg7[%c3, %c0_71, %c0_72] : memref<9x32x32xbf16, #tpu.memory_space<vmem>>, vector<1x32x32xbf16>
    %174 = vector.shape_cast %173 : vector<1x32x32xbf16> to vector<32x32xbf16>
    %cst_73 = arith.constant dense<0.000000e+00> : vector<8x32xf32>
    %175 = tpu.matmul %172, %174, %cst_73 {dimension_numbers = #tpu.dot_dimension_numbers<[1], [0], [0], [1], [0, 0, 1, 1], [], []>} : vector<8x32xbf16>, vector<32x32xbf16>, vector<8x32xf32> -> vector<8x32xf32>
    %176 = vector.extract_strided_slice %0 {offsets = [3, 0], sizes = [1, 32], strides = [1, 1]} : vector<16x32xf32> to vector<1x32xf32>
    %177 = vector.broadcast %176 : vector<1x32xf32> to vector<8x32xf32>
    %178 = arith.addf %175, %177 : vector<8x32xf32>
    %179 = vector.shape_cast %13 : vector<1x8x32xf32> to vector<8x32xf32>
    %180 = arith.addf %179, %178 : vector<8x32xf32>
    %181 = vector.extract_strided_slice %0 {offsets = [9, 0], sizes = [1, 32], strides = [1, 1]} : vector<16x32xf32> to vector<1x32xf32>
    %182 = vector.extract_strided_slice %0 {offsets = [10, 0], sizes = [1, 32], strides = [1, 1]} : vector<16x32xf32> to vector<1x32xf32>
    %cst_74 = arith.constant dense<0.000000e+00> : vector<8xf32>
    %183 = vector.multi_reduction <add>, %180, %cst_74 [1] : vector<8x32xf32> to vector<8xf32>
    %184 = vector.shape_cast %183 : vector<8xf32> to vector<8x1xf32>
    %cst_75 = arith.constant 3.200000e+01 : f32
    %185 = vector.broadcast %cst_75 : f32 to vector<8x1xf32>
    %186 = arith.divf %184, %185 : vector<8x1xf32>
    %187 = vector.broadcast %186 : vector<8x1xf32> to vector<8x32xf32>
    %188 = arith.subf %180, %187 : vector<8x32xf32>
    %189 = arith.mulf %188, %188 : vector<8x32xf32>
    %cst_76 = arith.constant dense<0.000000e+00> : vector<8xf32>
    %190 = vector.multi_reduction <add>, %189, %cst_76 [1] : vector<8x32xf32> to vector<8xf32>
    %191 = vector.shape_cast %190 : vector<8xf32> to vector<8x1xf32>
    %cst_77 = arith.constant 3.200000e+01 : f32
    %192 = vector.broadcast %cst_77 : f32 to vector<8x1xf32>
    %193 = arith.divf %191, %192 : vector<8x1xf32>
    %cst_78 = arith.constant 9.99999974E-6 : f32
    %194 = vector.broadcast %cst_78 : f32 to vector<8x1xf32>
    %195 = arith.addf %193, %194 : vector<8x1xf32>
    %196 = math.rsqrt %195 : vector<8x1xf32>
    %197 = vector.broadcast %196 : vector<8x1xf32> to vector<8x32xf32>
    %198 = arith.mulf %188, %197 : vector<8x32xf32>
    %199 = vector.broadcast %181 : vector<1x32xf32> to vector<8x32xf32>
    %200 = arith.mulf %198, %199 : vector<8x32xf32>
    %201 = vector.broadcast %182 : vector<1x32xf32> to vector<8x32xf32>
    %202 = arith.addf %200, %201 : vector<8x32xf32>
    %203 = vector.shape_cast %202 : vector<8x32xf32> to vector<1x8x32xf32>
    %204 = arith.addf %203, %15 : vector<1x8x32xf32>
    %205 = arith.extf %16 : vector<1x16x32xbf16> to vector<1x16x32xf32>
    %c0_79 = arith.constant 0 : index
    %c0_80 = arith.constant 0 : index
    %c0_81 = arith.constant 0 : index
    %206 = vector.load %arg4[%c0_79, %c0_80, %c0_81] : memref<1x16x32xbf16, #tpu.memory_space<vmem>>, vector<1x16x32xbf16>
    %207 = arith.extf %206 : vector<1x16x32xbf16> to vector<1x16x32xf32>
    %208 = arith.addf %205, %207 : vector<1x16x32xf32>
    %209 = vector.shape_cast %204 : vector<1x8x32xf32> to vector<8x32xf32>
    %210 = arith.truncf %209 : vector<8x32xf32> to vector<8x32xbf16>
    %c4 = arith.constant 4 : index
    %c0_82 = arith.constant 0 : index
    %c0_83 = arith.constant 0 : index
    %211 = vector.load %arg7[%c4, %c0_82, %c0_83] : memref<9x32x32xbf16, #tpu.memory_space<vmem>>, vector<1x32x32xbf16>
    %212 = vector.shape_cast %211 : vector<1x32x32xbf16> to vector<32x32xbf16>
    %cst_84 = arith.constant dense<0.000000e+00> : vector<8x32xf32>
    %213 = tpu.matmul %210, %212, %cst_84 {dimension_numbers = #tpu.dot_dimension_numbers<[1], [0], [0], [1], [0, 0, 1, 1], [], []>} : vector<8x32xbf16>, vector<32x32xbf16>, vector<8x32xf32> -> vector<8x32xf32>
    %214 = vector.extract_strided_slice %0 {offsets = [4, 0], sizes = [1, 32], strides = [1, 1]} : vector<16x32xf32> to vector<1x32xf32>
    %215 = vector.broadcast %214 : vector<1x32xf32> to vector<8x32xf32>
    %216 = arith.addf %213, %215 : vector<8x32xf32>
    %217 = vector.shape_cast %216 : vector<8x32xf32> to vector<1x8x32xf32>
    %218 = arith.truncf %217 : vector<1x8x32xf32> to vector<1x8x32xbf16>
    %219 = vector.shape_cast %208 : vector<1x16x32xf32> to vector<16x32xf32>
    %220 = arith.truncf %219 : vector<16x32xf32> to vector<16x32xbf16>
    %c5 = arith.constant 5 : index
    %c0_85 = arith.constant 0 : index
    %c0_86 = arith.constant 0 : index
    %221 = vector.load %arg7[%c5, %c0_85, %c0_86] : memref<9x32x32xbf16, #tpu.memory_space<vmem>>, vector<1x32x32xbf16>
    %222 = vector.shape_cast %221 : vector<1x32x32xbf16> to vector<32x32xbf16>
    %cst_87 = arith.constant dense<0.000000e+00> : vector<16x32xf32>
    %223 = tpu.matmul %220, %222, %cst_87 {dimension_numbers = #tpu.dot_dimension_numbers<[1], [0], [0], [1], [0, 0, 1, 1], [], []>} : vector<16x32xbf16>, vector<32x32xbf16>, vector<16x32xf32> -> vector<16x32xf32>
    %224 = vector.extract_strided_slice %0 {offsets = [5, 0], sizes = [1, 32], strides = [1, 1]} : vector<16x32xf32> to vector<1x32xf32>
    %225 = vector.broadcast %224 : vector<1x32xf32> to vector<16x32xf32>
    %226 = arith.addf %223, %225 : vector<16x32xf32>
    %227 = vector.shape_cast %226 : vector<16x32xf32> to vector<1x16x32xf32>
    %228 = arith.truncf %227 : vector<1x16x32xf32> to vector<1x16x32xbf16>
    %229 = vector.shape_cast %16 : vector<1x16x32xbf16> to vector<16x32xbf16>
    %c6 = arith.constant 6 : index
    %c0_88 = arith.constant 0 : index
    %c0_89 = arith.constant 0 : index
    %230 = vector.load %arg7[%c6, %c0_88, %c0_89] : memref<9x32x32xbf16, #tpu.memory_space<vmem>>, vector<1x32x32xbf16>
    %231 = vector.shape_cast %230 : vector<1x32x32xbf16> to vector<32x32xbf16>
    %cst_90 = arith.constant dense<0.000000e+00> : vector<16x32xf32>
    %232 = tpu.matmul %229, %231, %cst_90 {dimension_numbers = #tpu.dot_dimension_numbers<[1], [0], [0], [1], [0, 0, 1, 1], [], []>} : vector<16x32xbf16>, vector<32x32xbf16>, vector<16x32xf32> -> vector<16x32xf32>
    %233 = vector.extract_strided_slice %0 {offsets = [6, 0], sizes = [1, 32], strides = [1, 1]} : vector<16x32xf32> to vector<1x32xf32>
    %234 = vector.broadcast %233 : vector<1x32xf32> to vector<16x32xf32>
    %235 = arith.addf %232, %234 : vector<16x32xf32>
    %236 = vector.shape_cast %235 : vector<16x32xf32> to vector<1x16x32xf32>
    %237 = arith.truncf %236 : vector<1x16x32xf32> to vector<1x16x32xbf16>
    %238 = vector.shape_cast %12 : vector<1x1x16xf32> to vector<1x1x16xf32>
    %239 = vector.broadcast %238 : vector<1x1x16xf32> to vector<1x8x16xf32>
    %240 = vector.extract_strided_slice %218 {offsets = [0, 0, 0], sizes = [1, 8, 8], strides = [1, 1, 1]} : vector<1x8x32xbf16> to vector<1x8x8xbf16>
    %cst_91 = arith.constant -1.000000e+30 : f32
    %241 = vector.broadcast %cst_91 : f32 to vector<1x8x1xf32>
    %cst_92 = arith.constant 0.000000e+00 : f32
    %242 = vector.broadcast %cst_92 : f32 to vector<1x8x1xf32>
    %cst_93 = arith.constant 0.000000e+00 : f32
    %243 = vector.broadcast %cst_93 : f32 to vector<1x8x8xf32>
    %244 = vector.extract_strided_slice %228 {offsets = [0, 0, 0], sizes = [1, 16, 8], strides = [1, 1, 1]} : vector<1x16x32xbf16> to vector<1x16x8xbf16>
    %245 = vector.extract_strided_slice %237 {offsets = [0, 0, 0], sizes = [1, 16, 8], strides = [1, 1, 1]} : vector<1x16x32xbf16> to vector<1x16x8xbf16>
    "tpu.trace_start"() <{level = 10 : i32, message = "bqd,bkd->bqk"}> : () -> ()
    %cst_94 = arith.constant dense<0.000000e+00> : vector<1x8x16xf32>
    %246 = tpu.matmul %240, %244, %cst_94 {dimension_numbers = #tpu.dot_dimension_numbers<[2], [2], [1], [1], [0, 0, 0, 1, 1, 1], [0], [0]>} : vector<1x8x8xbf16>, vector<1x16x8xbf16>, vector<1x8x16xf32> -> vector<1x8x16xf32>
    "tpu.trace_stop"() : () -> ()
    %247 = arith.addf %246, %239 : vector<1x8x16xf32>
    %cst_95 = arith.constant dense<0xFF800000> : vector<1x8xf32>
    %248 = vector.multi_reduction <maximumf>, %247, %cst_95 [2] : vector<1x8x16xf32> to vector<1x8xf32>
    %249 = vector.shape_cast %248 : vector<1x8xf32> to vector<1x8x1xf32>
    %250 = arith.maximumf %241, %249 : vector<1x8x1xf32>
    %251 = arith.subf %241, %250 : vector<1x8x1xf32>
    %252 = math.exp %251 : vector<1x8x1xf32>
    %253 = vector.broadcast %250 : vector<1x8x1xf32> to vector<1x8x16xf32>
    %254 = arith.subf %247, %253 : vector<1x8x16xf32>
    %255 = arith.truncf %254 : vector<1x8x16xf32> to vector<1x8x16xbf16>
    %256 = math.exp %255 : vector<1x8x16xbf16>
    %257 = arith.extf %256 : vector<1x8x16xbf16> to vector<1x8x16xf32>
    %cst_96 = arith.constant dense<0.000000e+00> : vector<1x8xf32>
    %258 = vector.multi_reduction <add>, %257, %cst_96 [2] : vector<1x8x16xf32> to vector<1x8xf32>
    %259 = vector.shape_cast %258 : vector<1x8xf32> to vector<1x8x1xf32>
    %260 = arith.mulf %252, %242 : vector<1x8x1xf32>
    %261 = arith.addf %260, %259 : vector<1x8x1xf32>
    %262 = vector.broadcast %252 : vector<1x8x1xf32> to vector<1x8x8xf32>
    %263 = arith.mulf %262, %243 : vector<1x8x8xf32>
    "tpu.trace_start"() <{level = 10 : i32, message = "bqk,bkd->bqd"}> : () -> ()
    %cst_97 = arith.constant dense<0.000000e+00> : vector<1x8x8xf32>
    %264 = tpu.matmul %256, %245, %cst_97 {dimension_numbers = #tpu.dot_dimension_numbers<[2], [1], [1], [2], [0, 0, 0, 1, 1, 2], [0], [0]>} : vector<1x8x16xbf16>, vector<1x16x8xbf16>, vector<1x8x8xf32> -> vector<1x8x8xf32>
    "tpu.trace_stop"() : () -> ()
    %265 = arith.addf %263, %264 : vector<1x8x8xf32>
    %266 = tpu.reciprocal %261 {approx = true} : vector<1x8x1xf32> -> vector<1x8x1xf32>
    %267 = vector.broadcast %266 : vector<1x8x1xf32> to vector<1x8x8xf32>
    %268 = arith.mulf %265, %267 : vector<1x8x8xf32>
    %c0_98 = arith.constant 0 : index
    %c0_99 = arith.constant 0 : index
    %c0_100 = arith.constant 0 : index
    %269 = vector.load %arg10[%c0_98, %c0_99, %c0_100] : memref<1x8x32xf32, #tpu.memory_space<vmem>>, vector<1x8x8xf32>
    tpu.vector_store %arg10[%c0_98, %c0_99, %c0_100], %268 {strides = array<i32>} : memref<1x8x32xf32, #tpu.memory_space<vmem>>, vector<1x8x8xf32>,
    %270 = vector.extract_strided_slice %218 {offsets = [0, 0, 8], sizes = [1, 8, 8], strides = [1, 1, 1]} : vector<1x8x32xbf16> to vector<1x8x8xbf16>
    %cst_101 = arith.constant -1.000000e+30 : f32
    %271 = vector.broadcast %cst_101 : f32 to vector<1x8x1xf32>
    %cst_102 = arith.constant 0.000000e+00 : f32
    %272 = vector.broadcast %cst_102 : f32 to vector<1x8x1xf32>
    %cst_103 = arith.constant 0.000000e+00 : f32
    %273 = vector.broadcast %cst_103 : f32 to vector<1x8x8xf32>
    %274 = vector.extract_strided_slice %228 {offsets = [0, 0, 8], sizes = [1, 16, 8], strides = [1, 1, 1]} : vector<1x16x32xbf16> to vector<1x16x8xbf16>
    %275 = vector.extract_strided_slice %237 {offsets = [0, 0, 8], sizes = [1, 16, 8], strides = [1, 1, 1]} : vector<1x16x32xbf16> to vector<1x16x8xbf16>
    "tpu.trace_start"() <{level = 10 : i32, message = "bqd,bkd->bqk"}> : () -> ()
    %cst_104 = arith.constant dense<0.000000e+00> : vector<1x8x16xf32>
    %276 = tpu.matmul %270, %274, %cst_104 {dimension_numbers = #tpu.dot_dimension_numbers<[2], [2], [1], [1], [0, 0, 0, 1, 1, 1], [0], [0]>} : vector<1x8x8xbf16>, vector<1x16x8xbf16>, vector<1x8x16xf32> -> vector<1x8x16xf32>
    "tpu.trace_stop"() : () -> ()
    %277 = arith.addf %276, %239 : vector<1x8x16xf32>
    %cst_105 = arith.constant dense<0xFF800000> : vector<1x8xf32>
    %278 = vector.multi_reduction <maximumf>, %277, %cst_105 [2] : vector<1x8x16xf32> to vector<1x8xf32>
    %279 = vector.shape_cast %278 : vector<1x8xf32> to vector<1x8x1xf32>
    %280 = arith.maximumf %271, %279 : vector<1x8x1xf32>
    %281 = arith.subf %271, %280 : vector<1x8x1xf32>
    %282 = math.exp %281 : vector<1x8x1xf32>
    %283 = vector.broadcast %280 : vector<1x8x1xf32> to vector<1x8x16xf32>
    %284 = arith.subf %277, %283 : vector<1x8x16xf32>
    %285 = arith.truncf %284 : vector<1x8x16xf32> to vector<1x8x16xbf16>
    %286 = math.exp %285 : vector<1x8x16xbf16>
    %287 = arith.extf %286 : vector<1x8x16xbf16> to vector<1x8x16xf32>
    %cst_106 = arith.constant dense<0.000000e+00> : vector<1x8xf32>
    %288 = vector.multi_reduction <add>, %287, %cst_106 [2] : vector<1x8x16xf32> to vector<1x8xf32>
    %289 = vector.shape_cast %288 : vector<1x8xf32> to vector<1x8x1xf32>
    %290 = arith.mulf %282, %272 : vector<1x8x1xf32>
    %291 = arith.addf %290, %289 : vector<1x8x1xf32>
    %292 = vector.broadcast %282 : vector<1x8x1xf32> to vector<1x8x8xf32>
    %293 = arith.mulf %292, %273 : vector<1x8x8xf32>
    "tpu.trace_start"() <{level = 10 : i32, message = "bqk,bkd->bqd"}> : () -> ()
    %cst_107 = arith.constant dense<0.000000e+00> : vector<1x8x8xf32>
    %294 = tpu.matmul %286, %275, %cst_107 {dimension_numbers = #tpu.dot_dimension_numbers<[2], [1], [1], [2], [0, 0, 0, 1, 1, 2], [0], [0]>} : vector<1x8x16xbf16>, vector<1x16x8xbf16>, vector<1x8x8xf32> -> vector<1x8x8xf32>
    "tpu.trace_stop"() : () -> ()
    %295 = arith.addf %293, %294 : vector<1x8x8xf32>
    %296 = tpu.reciprocal %291 {approx = true} : vector<1x8x1xf32> -> vector<1x8x1xf32>
    %297 = vector.broadcast %296 : vector<1x8x1xf32> to vector<1x8x8xf32>
    %298 = arith.mulf %295, %297 : vector<1x8x8xf32>
    %c0_108 = arith.constant 0 : index
    %c0_109 = arith.constant 0 : index
    %c8_110 = arith.constant 8 : index
    %299 = vector.load %arg10[%c0_108, %c0_109, %c8_110] : memref<1x8x32xf32, #tpu.memory_space<vmem>>, vector<1x8x8xf32>
    tpu.vector_store %arg10[%c0_108, %c0_109, %c8_110], %298 {strides = array<i32>} : memref<1x8x32xf32, #tpu.memory_space<vmem>>, vector<1x8x8xf32>,
    %300 = vector.extract_strided_slice %218 {offsets = [0, 0, 16], sizes = [1, 8, 8], strides = [1, 1, 1]} : vector<1x8x32xbf16> to vector<1x8x8xbf16>
    %cst_111 = arith.constant -1.000000e+30 : f32
    %301 = vector.broadcast %cst_111 : f32 to vector<1x8x1xf32>
    %cst_112 = arith.constant 0.000000e+00 : f32
    %302 = vector.broadcast %cst_112 : f32 to vector<1x8x1xf32>
    %cst_113 = arith.constant 0.000000e+00 : f32
    %303 = vector.broadcast %cst_113 : f32 to vector<1x8x8xf32>
    %304 = vector.extract_strided_slice %228 {offsets = [0, 0, 16], sizes = [1, 16, 8], strides = [1, 1, 1]} : vector<1x16x32xbf16> to vector<1x16x8xbf16>
    %305 = vector.extract_strided_slice %237 {offsets = [0, 0, 16], sizes = [1, 16, 8], strides = [1, 1, 1]} : vector<1x16x32xbf16> to vector<1x16x8xbf16>
    "tpu.trace_start"() <{level = 10 : i32, message = "bqd,bkd->bqk"}> : () -> ()
    %cst_114 = arith.constant dense<0.000000e+00> : vector<1x8x16xf32>
    %306 = tpu.matmul %300, %304, %cst_114 {dimension_numbers = #tpu.dot_dimension_numbers<[2], [2], [1], [1], [0, 0, 0, 1, 1, 1], [0], [0]>} : vector<1x8x8xbf16>, vector<1x16x8xbf16>, vector<1x8x16xf32> -> vector<1x8x16xf32>
    "tpu.trace_stop"() : () -> ()
    %307 = arith.addf %306, %239 : vector<1x8x16xf32>
    %cst_115 = arith.constant dense<0xFF800000> : vector<1x8xf32>
    %308 = vector.multi_reduction <maximumf>, %307, %cst_115 [2] : vector<1x8x16xf32> to vector<1x8xf32>
    %309 = vector.shape_cast %308 : vector<1x8xf32> to vector<1x8x1xf32>
    %310 = arith.maximumf %301, %309 : vector<1x8x1xf32>
    %311 = arith.subf %301, %310 : vector<1x8x1xf32>
    %312 = math.exp %311 : vector<1x8x1xf32>
    %313 = vector.broadcast %310 : vector<1x8x1xf32> to vector<1x8x16xf32>
    %314 = arith.subf %307, %313 : vector<1x8x16xf32>
    %315 = arith.truncf %314 : vector<1x8x16xf32> to vector<1x8x16xbf16>
    %316 = math.exp %315 : vector<1x8x16xbf16>
    %317 = arith.extf %316 : vector<1x8x16xbf16> to vector<1x8x16xf32>
    %cst_116 = arith.constant dense<0.000000e+00> : vector<1x8xf32>
    %318 = vector.multi_reduction <add>, %317, %cst_116 [2] : vector<1x8x16xf32> to vector<1x8xf32>
    %319 = vector.shape_cast %318 : vector<1x8xf32> to vector<1x8x1xf32>
    %320 = arith.mulf %312, %302 : vector<1x8x1xf32>
    %321 = arith.addf %320, %319 : vector<1x8x1xf32>
    %322 = vector.broadcast %312 : vector<1x8x1xf32> to vector<1x8x8xf32>
    %323 = arith.mulf %322, %303 : vector<1x8x8xf32>
    "tpu.trace_start"() <{level = 10 : i32, message = "bqk,bkd->bqd"}> : () -> ()
    %cst_117 = arith.constant dense<0.000000e+00> : vector<1x8x8xf32>
    %324 = tpu.matmul %316, %305, %cst_117 {dimension_numbers = #tpu.dot_dimension_numbers<[2], [1], [1], [2], [0, 0, 0, 1, 1, 2], [0], [0]>} : vector<1x8x16xbf16>, vector<1x16x8xbf16>, vector<1x8x8xf32> -> vector<1x8x8xf32>
    "tpu.trace_stop"() : () -> ()
    %325 = arith.addf %323, %324 : vector<1x8x8xf32>
    %326 = tpu.reciprocal %321 {approx = true} : vector<1x8x1xf32> -> vector<1x8x1xf32>
    %327 = vector.broadcast %326 : vector<1x8x1xf32> to vector<1x8x8xf32>
    %328 = arith.mulf %325, %327 : vector<1x8x8xf32>
    %c0_118 = arith.constant 0 : index
    %c0_119 = arith.constant 0 : index
    %c16_120 = arith.constant 16 : index
    %329 = vector.load %arg10[%c0_118, %c0_119, %c16_120] : memref<1x8x32xf32, #tpu.memory_space<vmem>>, vector<1x8x8xf32>
    tpu.vector_store %arg10[%c0_118, %c0_119, %c16_120], %328 {strides = array<i32>} : memref<1x8x32xf32, #tpu.memory_space<vmem>>, vector<1x8x8xf32>,
    %330 = vector.extract_strided_slice %218 {offsets = [0, 0, 24], sizes = [1, 8, 8], strides = [1, 1, 1]} : vector<1x8x32xbf16> to vector<1x8x8xbf16>
    %cst_121 = arith.constant -1.000000e+30 : f32
    %331 = vector.broadcast %cst_121 : f32 to vector<1x8x1xf32>
    %cst_122 = arith.constant 0.000000e+00 : f32
    %332 = vector.broadcast %cst_122 : f32 to vector<1x8x1xf32>
    %cst_123 = arith.constant 0.000000e+00 : f32
    %333 = vector.broadcast %cst_123 : f32 to vector<1x8x8xf32>
    %334 = vector.extract_strided_slice %228 {offsets = [0, 0, 24], sizes = [1, 16, 8], strides = [1, 1, 1]} : vector<1x16x32xbf16> to vector<1x16x8xbf16>
    %335 = vector.extract_strided_slice %237 {offsets = [0, 0, 24], sizes = [1, 16, 8], strides = [1, 1, 1]} : vector<1x16x32xbf16> to vector<1x16x8xbf16>
    "tpu.trace_start"() <{level = 10 : i32, message = "bqd,bkd->bqk"}> : () -> ()
    %cst_124 = arith.constant dense<0.000000e+00> : vector<1x8x16xf32>
    %336 = tpu.matmul %330, %334, %cst_124 {dimension_numbers = #tpu.dot_dimension_numbers<[2], [2], [1], [1], [0, 0, 0, 1, 1, 1], [0], [0]>} : vector<1x8x8xbf16>, vector<1x16x8xbf16>, vector<1x8x16xf32> -> vector<1x8x16xf32>
    "tpu.trace_stop"() : () -> ()
    %337 = arith.addf %336, %239 : vector<1x8x16xf32>
    %cst_125 = arith.constant dense<0xFF800000> : vector<1x8xf32>
    %338 = vector.multi_reduction <maximumf>, %337, %cst_125 [2] : vector<1x8x16xf32> to vector<1x8xf32>
    %339 = vector.shape_cast %338 : vector<1x8xf32> to vector<1x8x1xf32>
    %340 = arith.maximumf %331, %339 : vector<1x8x1xf32>
    %341 = arith.subf %331, %340 : vector<1x8x1xf32>
    %342 = math.exp %341 : vector<1x8x1xf32>
    %343 = vector.broadcast %340 : vector<1x8x1xf32> to vector<1x8x16xf32>
    %344 = arith.subf %337, %343 : vector<1x8x16xf32>
    %345 = arith.truncf %344 : vector<1x8x16xf32> to vector<1x8x16xbf16>
    %346 = math.exp %345 : vector<1x8x16xbf16>
    %347 = arith.extf %346 : vector<1x8x16xbf16> to vector<1x8x16xf32>
    %cst_126 = arith.constant dense<0.000000e+00> : vector<1x8xf32>
    %348 = vector.multi_reduction <add>, %347, %cst_126 [2] : vector<1x8x16xf32> to vector<1x8xf32>
    %349 = vector.shape_cast %348 : vector<1x8xf32> to vector<1x8x1xf32>
    %350 = arith.mulf %342, %332 : vector<1x8x1xf32>
    %351 = arith.addf %350, %349 : vector<1x8x1xf32>
    %352 = vector.broadcast %342 : vector<1x8x1xf32> to vector<1x8x8xf32>
    %353 = arith.mulf %352, %333 : vector<1x8x8xf32>
    "tpu.trace_start"() <{level = 10 : i32, message = "bqk,bkd->bqd"}> : () -> ()
    %cst_127 = arith.constant dense<0.000000e+00> : vector<1x8x8xf32>
    %354 = tpu.matmul %346, %335, %cst_127 {dimension_numbers = #tpu.dot_dimension_numbers<[2], [1], [1], [2], [0, 0, 0, 1, 1, 2], [0], [0]>} : vector<1x8x16xbf16>, vector<1x16x8xbf16>, vector<1x8x8xf32> -> vector<1x8x8xf32>
    "tpu.trace_stop"() : () -> ()
    %355 = arith.addf %353, %354 : vector<1x8x8xf32>
    %356 = tpu.reciprocal %351 {approx = true} : vector<1x8x1xf32> -> vector<1x8x1xf32>
    %357 = vector.broadcast %356 : vector<1x8x1xf32> to vector<1x8x8xf32>
    %358 = arith.mulf %355, %357 : vector<1x8x8xf32>
    %c0_128 = arith.constant 0 : index
    %c0_129 = arith.constant 0 : index
    %c24_130 = arith.constant 24 : index
    %359 = vector.load %arg10[%c0_128, %c0_129, %c24_130] : memref<1x8x32xf32, #tpu.memory_space<vmem>>, vector<1x8x8xf32>
    tpu.vector_store %arg10[%c0_128, %c0_129, %c24_130], %358 {strides = array<i32>} : memref<1x8x32xf32, #tpu.memory_space<vmem>>, vector<1x8x8xf32>,
    %c0_131 = arith.constant 0 : index
    %c0_132 = arith.constant 0 : index
    %c0_133 = arith.constant 0 : index
    %360 = vector.load %arg10[%c0_131, %c0_132, %c0_133] : memref<1x8x32xf32, #tpu.memory_space<vmem>>, vector<1x8x32xf32>
    %361 = vector.shape_cast %360 : vector<1x8x32xf32> to vector<8x32xf32>
    %362 = arith.truncf %361 : vector<8x32xf32> to vector<8x32xbf16>
    %c7 = arith.constant 7 : index
    %c0_134 = arith.constant 0 : index
    %c0_135 = arith.constant 0 : index
    %363 = vector.load %arg7[%c7, %c0_134, %c0_135] : memref<9x32x32xbf16, #tpu.memory_space<vmem>>, vector<1x32x32xbf16>
    %364 = vector.shape_cast %363 : vector<1x32x32xbf16> to vector<32x32xbf16>
    %cst_136 = arith.constant dense<0.000000e+00> : vector<8x32xf32>
    %365 = tpu.matmul %362, %364, %cst_136 {dimension_numbers = #tpu.dot_dimension_numbers<[1], [0], [0], [1], [0, 0, 1, 1], [], []>} : vector<8x32xbf16>, vector<32x32xbf16>, vector<8x32xf32> -> vector<8x32xf32>
    %366 = vector.extract_strided_slice %0 {offsets = [7, 0], sizes = [1, 32], strides = [1, 1]} : vector<16x32xf32> to vector<1x32xf32>
    %367 = vector.broadcast %366 : vector<1x32xf32> to vector<8x32xf32>
    %368 = arith.addf %365, %367 : vector<8x32xf32>
    %369 = arith.truncf %368 : vector<8x32xf32> to vector<8x32xbf16>
    %c8_137 = arith.constant 8 : index
    %c0_138 = arith.constant 0 : index
    %c0_139 = arith.constant 0 : index
    %370 = vector.load %arg7[%c8_137, %c0_138, %c0_139] : memref<9x32x32xbf16, #tpu.memory_space<vmem>>, vector<1x32x32xbf16>
    %371 = vector.shape_cast %370 : vector<1x32x32xbf16> to vector<32x32xbf16>
    %cst_140 = arith.constant dense<0.000000e+00> : vector<8x32xf32>
    %372 = tpu.matmul %369, %371, %cst_140 {dimension_numbers = #tpu.dot_dimension_numbers<[1], [0], [0], [1], [0, 0, 1, 1], [], []>} : vector<8x32xbf16>, vector<32x32xbf16>, vector<8x32xf32> -> vector<8x32xf32>
    %373 = vector.extract_strided_slice %0 {offsets = [8, 0], sizes = [1, 32], strides = [1, 1]} : vector<16x32xf32> to vector<1x32xf32>
    %374 = vector.broadcast %373 : vector<1x32xf32> to vector<8x32xf32>
    %375 = arith.addf %372, %374 : vector<8x32xf32>
    %376 = arith.addf %202, %375 : vector<8x32xf32>
    %377 = vector.extract_strided_slice %0 {offsets = [11, 0], sizes = [1, 32], strides = [1, 1]} : vector<16x32xf32> to vector<1x32xf32>
    %378 = vector.extract_strided_slice %0 {offsets = [12, 0], sizes = [1, 32], strides = [1, 1]} : vector<16x32xf32> to vector<1x32xf32>
    %cst_141 = arith.constant dense<0.000000e+00> : vector<8xf32>
    %379 = vector.multi_reduction <add>, %376, %cst_141 [1] : vector<8x32xf32> to vector<8xf32>
    %380 = vector.shape_cast %379 : vector<8xf32> to vector<8x1xf32>
    %cst_142 = arith.constant 3.200000e+01 : f32
    %381 = vector.broadcast %cst_142 : f32 to vector<8x1xf32>
    %382 = arith.divf %380, %381 : vector<8x1xf32>
    %383 = vector.broadcast %382 : vector<8x1xf32> to vector<8x32xf32>
    %384 = arith.subf %376, %383 : vector<8x32xf32>
    %385 = arith.mulf %384, %384 : vector<8x32xf32>
    %cst_143 = arith.constant dense<0.000000e+00> : vector<8xf32>
    %386 = vector.multi_reduction <add>, %385, %cst_143 [1] : vector<8x32xf32> to vector<8xf32>
    %387 = vector.shape_cast %386 : vector<8xf32> to vector<8x1xf32>
    %cst_144 = arith.constant 3.200000e+01 : f32
    %388 = vector.broadcast %cst_144 : f32 to vector<8x1xf32>
    %389 = arith.divf %387, %388 : vector<8x1xf32>
    %cst_145 = arith.constant 9.99999974E-6 : f32
    %390 = vector.broadcast %cst_145 : f32 to vector<8x1xf32>
    %391 = arith.addf %389, %390 : vector<8x1xf32>
    %392 = math.rsqrt %391 : vector<8x1xf32>
    %393 = vector.broadcast %392 : vector<8x1xf32> to vector<8x32xf32>
    %394 = arith.mulf %384, %393 : vector<8x32xf32>
    %395 = vector.broadcast %377 : vector<1x32xf32> to vector<8x32xf32>
    %396 = arith.mulf %394, %395 : vector<8x32xf32>
    %397 = vector.broadcast %378 : vector<1x32xf32> to vector<8x32xf32>
    %398 = arith.addf %396, %397 : vector<8x32xf32>
    %399 = vector.shape_cast %398 : vector<8x32xf32> to vector<1x8x32xf32>
    %c0_146 = arith.constant 0 : index
    %c0_147 = arith.constant 0 : index
    %c0_148 = arith.constant 0 : index
    %400 = vector.load %arg9[%c0_146, %c0_147, %c0_148] : memref<1x8x32xf32, #tpu.memory_space<vmem>>, vector<1x8x32xf32>
    tpu.vector_store %arg9[%c0_146, %c0_147, %c0_148], %399 {strides = array<i32>} : memref<1x8x32xf32, #tpu.memory_space<vmem>>, vector<1x8x32xf32>,
    return
  }
  func.func @transform_0(%arg0: i32) -> (i32, i32, i32) {
    %c0_i32 = arith.constant 0 : i32
    %c0_i32_0 = arith.constant 0 : i32
    %c0_i32_1 = arith.constant 0 : i32
    return %arg0, %c0_i32, %c0_i32_0 : i32, i32, i32
  }
  func.func @transform_1(%arg0: i32) -> (i32, i32, i32) {
    %c0_i32 = arith.constant 0 : i32
    %c0_i32_0 = arith.constant 0 : i32
    %c0_i32_1 = arith.constant 0 : i32
    return %arg0, %c0_i32, %c0_i32_0 : i32, i32, i32
  }
  func.func @transform_2(%arg0: i32) -> (i32, i32, i32) {
    %c0_i32 = arith.constant 0 : i32
    %c0_i32_0 = arith.constant 0 : i32
    %c0_i32_1 = arith.constant 0 : i32
    return %arg0, %c0_i32, %c0_i32_0 : i32, i32, i32
  }
  func.func @transform_3(%arg0: i32) -> (i32, i32, i32) {
    %c0_i32 = arith.constant 0 : i32
    %c0_i32_0 = arith.constant 0 : i32
    %c0_i32_1 = arith.constant 0 : i32
    return %arg0, %c0_i32, %c0_i32_0 : i32, i32, i32
  }
  func.func @transform_4(%arg0: i32) -> (i32, i32, i32) {
    %c0_i32 = arith.constant 0 : i32
    %c0_i32_0 = arith.constant 0 : i32
    %c0_i32_1 = arith.constant 0 : i32
    return %arg0, %c0_i32, %c0_i32_0 : i32, i32, i32
  }
  func.func @transform_5(%arg0: i32) -> (i32, i32, i32) {
    %c0_i32 = arith.constant 0 : i32
    %c0_i32_0 = arith.constant 0 : i32
    %c0_i32_1 = arith.constant 0 : i32
    return %arg0, %c0_i32, %c0_i32_0 : i32, i32, i32
  }
  func.func @transform_6(%arg0: i32) -> (i32, i32, i32) {
    %c0_i32 = arith.constant 0 : i32
    %c0_i32_0 = arith.constant 0 : i32
    %c0_i32_1 = arith.constant 0 : i32
    %c0_i32_2 = arith.constant 0 : i32
    return %c0_i32, %c0_i32_0, %c0_i32_1 : i32, i32, i32
  }
  func.func @transform_7(%arg0: i32) -> (i32, i32) {
    %c0_i32 = arith.constant 0 : i32
    %c0_i32_0 = arith.constant 0 : i32
    %c0_i32_1 = arith.constant 0 : i32
    return %c0_i32, %c0_i32_0 : i32, i32
  }
  func.func @transform_8(%arg0: i32) -> (i32, i32, i32) {
    %c0_i32 = arith.constant 0 : i32
    %c0_i32_0 = arith.constant 0 : i32
    %c0_i32_1 = arith.constant 0 : i32
    return %arg0, %c0_i32, %c0_i32_0 : i32, i32, i32
  }
}

</mosaic_0001>

<bundles_post_ra>
// kernel: _lambda_.1
= control target key start
LH: loop header
LB: loop body
LE: loop exit
PB: predicated region body
PF: predicated region fallthrough
CT: control target
= control target key end

     0   :  { %s2622_s27 = smov 0   ;;  %s2989_s0 = inlined_call_operand.vmem [shape: f32[2,8,32], index: 0, kind: input, shape index: {}]   ;;  %s2990_s1 = inlined_call_operand.vmem [shape: bf16[2,16,32], index: 1, kind: input, shape index: {}]   ;;  %s2991_s2 = inlined_call_operand.vmem [shape: bf16[2,8,32], index: 2, kind: input, shape index: {}]   ;;  %s2992_s3 = inlined_call_operand.vmem [shape: bf16[2,16,32], index: 3, kind: input, shape index: {}]   ;;  %s2993_s4 = inlined_call_operand.vmem [shape: f32[2,1,8], index: 4, kind: input, shape index: {}]   ;;  %s2994_s5 = inlined_call_operand.vmem [shape: f32[2,1,16], index: 5, kind: input, shape index: {}]   ;;  %s2995_s6 = inlined_call_operand.vmem [shape: bf16[9,32,32], index: 6, kind: input, shape index: {}]   ;;  %s2996_s7 = inlined_call_operand.vmem [shape: f32[16,32], index: 7, kind: input, shape index: {}]   ;;  %s2997_s8 = inlined_call_operand.vmem [shape: f32[2,8,32], index: 8, kind: output, shape index: {}]  }
   0x1 LB: > { %s2149_s28 = sadd.s32 4294967295, %s2567_s27   ;;  %p2153_p0 = scmp.ge.s32.totalorder %s2567_s27, 1  ;;  %s2567_s27 = sphi %s2622_s27, %s18_s27  }
   0x2   : > { %p306_p1 = scmp.lt.s32.totalorder %s2567_s27, 3 }
   0x4   : > { %p307_p2 = pnand %p2153_p0, %p306_p1 }
   0x5   : > { %v2488_v0 = vld [vmem:[%s2995_s6 + $0x10] sm:$0xff] (!%p307_p2)   ;;  %v2569_v1 = vmov (!%p307_p2), 0.0   ;;  %v2489_v2 = vld [vmem:[%s2995_s6] sm:$0xff] (!%p307_p2)   ;;  %v2490_v3 = vld [vmem:[%s2995_s6 + $0x18] sm:$0xff] (!%p307_p2)   ;;  %vm2570_vm0 = vmmov (!%p307_p2), 0   ;;  %p358_p3 = scmp.lt.s32.totalorder (!%p307_p2), %s2149_s28, 1  ;;  %v406_v10 = vlaneseq (!%p307_p2) }
   0x6   : > { %310 = sbr.rel (%p307_p2) target bundleno = 3441 (0xd71), region = 52  ;;  %2312 = vmatprep.subr.bf16.mxu1 (!%p307_p2), %v2569_v1  ;;  %2304 = vmatprep.subr.bf16.mxu0 (!%p307_p2), %v2569_v1  ;;  %v2491_v4 = vld [vmem:[%s2995_s6 + $0x8] sm:$0xff] (!%p307_p2)   ;;  %vm422_vm1 = vcmask (!%p307_p2), 261120   ;;  %v2688_v14 = vld [vmem:[%s2996_s7] sm:$0xff] (!%p307_p2)  ;;  %vm601_vm2 = vcmask (!%p307_p2), 64512   ;;  %s2571_s25 = smov (!%p307_p2), 112  }
   0x7   : > { %2313 = vmatpush3.bf16.msra.mxu1 (!%p307_p2), %v2488_v0  ;;  %2316 = vmatprep.mubr.msk.bf16.mxu1 (!%p307_p2), %vm2570_vm0, %v2569_v1  ;;  %v2679_v11 = vshrl.u32 (!%p307_p2), %v406_v10, 7  ;;  %s2572_s26 = smov (!%p307_p2), 120   ;;  %s2573_s29 = smov (!%p307_p2), 104   ;;  %v2492_v30 = vld [vmem:[%s2995_s6 + $0x20] sm:$0xff] (!%p307_p2)   ;;  %v2493_v31 = vld [vmem:[%s2995_s6 + $0x28] sm:$0xff] (!%p307_p2)   ;;  %vm669_vm4 = vcmask (!%p307_p2), 1043456  }
   0x8   : > { %2314 = vmatprep.subr.bf16.mxu1 (!%p307_p2), %v2569_v1  ;;  %2305 = vmatpush3.bf16.msra.mxu0 (!%p307_p2), %v2489_v2  ;;  %s2575_s21 = smov (!%p307_p2), 16   ;;  %vm843_vm5 = vcmask (!%p307_p2), 130112   ;;  %vm968_vm6 = vcmask (!%p307_p2), 195712   ;;  %vm1093_vm7 = vcmask (!%p307_p2), 261312   ;;  %vm1451_vm9 = vcmask (!%p307_p2), 130048  }
   0x9   : > { %2306 = vmatprep.subr.bf16.mxu0 (!%p307_p2), %v2569_v1  ;;  %2308 = vmatprep.mubr.msk.bf16.mxu0 (!%p307_p2), %vm2570_vm0, %v2569_v1  ;;  %v474_v12 = vsub.s32 (!%p307_p2), 1, %v2679_v11  ;;  %v2683_v13 = vsub.s32 (!%p307_p2), 0, %v2679_v11  ;;  %v537_v51 = vsub.s32 (!%p307_p2), 2, %v2679_v11 }
   0xb   : > { %2315 = vmatpush3.bf16.msra.mxu1 (!%p307_p2), %v2490_v3  ;;  %v475_v15 = vrot.slane (!%p307_p2), %v2688_v14, %v474_v12  ;;  %v409_v16 = vrot.slane (!%p307_p2), %v2688_v14, %v2683_v13  ;;  %v538_v52 = vrot.slane (!%p307_p2), %v2688_v14, %v537_v51 }
   0xc   : > { %2307 = vmatpush3.bf16.msra.mxu0 (!%p307_p2), %v2491_v4  ;;  %2328 = vmatprep.subr.bf16.mxu1 (!%p307_p2), %v2569_v1 }
   0xd   : > { %s2999_s28 = smov (!%p358_p3, %s2149_s28), 1  ;;  %2320 = vmatprep.subr.bf16.mxu0 %v2569_v1 }
   0xe   : > { %s2653_s15 = sshll.u32 %s2999_s28, 3  ;;  %s2157_s16 = sshll.u32 %s2999_s28, 2 }
   0xf   : > { %s361_s19 = scalar_lea.vmem %s2989_s0, %s2653_s15  ;;  %s370_s22 = scalar_lea.vmem %s2991_s2, %s2157_s16 }
  0x10   : > { %v2664_v5 = vld [vmem:[%s361_s19] sm:$0xff]  ;;  %s378_s14 = scalar_lea.vmem %s2993_s4, %s2999_s28  ;;  %s2574_s16 = smov 8  }
  0x11   : > { %v2666_v6 = vld [vmem:[%s370_s22] sm:$0xf]  ;;  %v529_v32 = vpack.c.bf16 %v2664_v5, %v2664_v5  ;;  %s2576_s22 = smov 24   ;;  %s366_s10 = scalar_lea.vmem %s2990_s1, %s2653_s15 }
  0x12   : > { %v397_v7 = vunpack.c.l.bf16 %v2666_v6  ;;  %v389_v42 = vld [vmem:[%s378_s14] sm:$0x1]  ;;  %s375_s13 = scalar_lea.vmem %s2992_s3, %s2653_s15  ;;  %s381_s17 = scalar_lea.vmem %s2994_s5, %s2999_s28 }
  0x13   : > { %vm390_vm3 = vcmp.ne.f32.partialorder %v389_v42, 0.0  ;;  %s385_s30 = scalar_lea.vmem %s2997_s8, %s2653_s15 }
  0x14   : > { %v400_v8 = vadd.f32 %v397_v7, %v2664_v5  ;;  %v391_v43 = vsel %vm390_vm3, -1e+30, %v2569_v1 }
  0x15   : > { %v599_v44 = vrot.slane %v391_v43, %v2683_v13 }
  0x16   : > { %v401_v9 = vpack.c.bf16 %v400_v8, %v400_v8 }
  0x18   : > { %2317 = vmatmul.mubr.msk.bf16.vlgmr.msra.gmra.mrb[0].mxu1 %vm422_vm1, %v401_v9  ;;  %2309 = vmatmul.mubr.msk.bf16.vlgmr.msra.gmra.mrb[0].mxu0 %vm422_vm1, %v401_v9 }
  0x19   : > { %2330 = vmatprep.mubr.msk.bf16.mxu1 %vm2570_vm0, %v2569_v1  ;;  %2324 = vmatprep.mubr.msk.bf16.mxu0 %vm2570_vm0, %v2569_v1 }
  0x1a   : > { %2321 = vmatpush3.bf16.msra.mxu0 %v2492_v30 }
  0x1b   : > { %2322 = vmatprep.subr.bf16.mxu0 %v2569_v1 }
  0x1e   : > { %2323 = vmatpush3.bf16.msra.mxu0 %v2493_v31 }
  0x1f   : > { %2334 = vmatprep.subr.bf16.mxu0 %v2569_v1 }
  0x21   : > { %2325 = vmatmul.mubr.msk.bf16.vlgmr.msra.gmra.mrb[4].mxu0 %vm422_vm1, %v529_v32 }
  0x22   : > { %2336 = vmatprep.mubr.msk.bf16.mxu0 %vm2570_vm0, %v2569_v1 }
  0xeb   : > { %v522_v17 = vpop.f32.mrb[0].mxu1  ;;  %v460_v18 = vpop.f32.mrb[0].mxu0 }
  0xec   : > { %v523_v19 = vadd.f32 %v522_v17, %v475_v15  ;;  %v2318_v20 = vpop.f32.mrb[1].mxu1  ;;  %v461_v21 = vadd.f32 %v460_v18, %v409_v16  ;;  %v2310_v22 = vpop.f32.mrb[1].mxu0 }
  0xed   : > { %v525_v23 = vpop.f32.mrb[2].mxu1  ;;  %v463_v24 = vpop.f32.mrb[2].mxu0 }
  0xee   : > { %v528_v25 = vpack.c.bf16 %v523_v19, %v523_v19  ;;  %v2319_v26 = vpop.f32.mrb[3].mxu1  ;;  %v2311_v27 = vpop.f32.mrb[3].mxu0  ;;  %v466_v28 = vpack.c.bf16 %v461_v21, %v461_v21 }
  0xf0   : > { %847 = vrot.lane.b32.xlu1 %v528_v25, %s2571_s25  ;;  %721 = vrot.lane.b32.xlu0 %v528_v25, %s2572_s26  ;;  %v606_v29 = vsel %vm601_vm2, %v528_v25, 0 }
  0xf1   : > { %2329 = vmatpush3.bf16.xpose.msra.mxu1 %v606_v29 }
  0xf2   : > { %2340 = vmatprep.subr.bf16.mxu1 %v2569_v1 }
  0xf4   : > { %845 = vrot.lane.b32.xlu1 %v466_v28, %s2571_s25  ;;  %718 = vrot.lane.b32.xlu0 %v466_v28, %s2572_s26  ;;  %v588_v53 = vpop.f32.mrb[4].mxu0 }
  0xf5   : > { %v589_v54 = vadd.f32 %v588_v53, %v538_v52  ;;  %v2326_v55 = vpop.f32.mrb[5].mxu0 }
  0xf6   : > { %v591_v56 = vpop.f32.mrb[6].mxu0 }
  0xf7   : > { %v594_v57 = vpack.c.bf16 %v589_v54, %v589_v54  ;;  %v2327_v58 = vpop.f32.mrb[7].mxu0 }
  0xf8   : > { %970 = vrot.lane.b32.xlu1 %v466_v28, %s2573_s29  ;;  %972 = vrot.lane.b32.xlu0 %v528_v25, %s2573_s29 }
  0xf9   : > { %2331 = vmatmul.mubr.msk.bf16.vlgmr.msra.gmra.mrb[4].mxu1 %vm601_vm2, %v466_v28  ;;  %v671_v59 = vsel %vm669_vm4, %v594_v57, 0 }
  0xfa   : > { %2342 = vmatprep.mubr.msk.bf16.mxu1 %vm2570_vm0, %v2569_v1  ;;  %2335 = vmatpush3.bf16.msra.mxu0 %v671_v59 }
  0xfb   : > { %2346 = vmatprep.subr.bf16.mxu0 %v2569_v1 }
 0x162   : > { %v722_v33 = vpop.permute.xlu0 %721  ;;  %v848_v35 = vpop.permute.xlu1 %847 }
 0x163   : > { %v727_v34 = vsel %vm601_vm2, %v722_v33, 0  ;;  %v853_v37 = vsel %vm601_vm2, %v848_v35, 0 }
 0x164   : > { %2341 = vmatpush3.bf16.xpose.msra.mxu1 %v727_v34 }
 0x165   : > { %2352 = vmatprep.subr.bf16.mxu1 %v2569_v1 }
 0x166   : > { %v719_v36 = vpop.permute.xlu0 %718  ;;  %v846_v39 = vpop.permute.xlu1 %845 }
 0x16a   : > { %v973_v38 = vpop.permute.xlu0 %972  ;;  %v971_v41 = vpop.permute.xlu1 %970 }
 0x16b   : > { %2343 = vmatmul.mubr.msk.bf16.vlgmr.msra.gmra.mrb[8].mxu1 %vm601_vm2, %v719_v36  ;;  %v978_v40 = vsel %vm601_vm2, %v973_v38, 0 }
 0x16c   : > { %2353 = vmatpush3.bf16.xpose.msra.mxu1 %v853_v37  ;;  %2354 = vmatprep.mubr.msk.bf16.mxu1 %vm2570_vm0, %v2569_v1 }
 0x16d   : > { %2364 = vmatprep.subr.bf16.mxu1 %v2569_v1 }
 0x173   : > { %2355 = vmatmul.mubr.msk.bf16.vlgmr.msra.gmra.mrb[12].mxu1 %vm601_vm2, %v846_v39 }
 0x174   : > { %2365 = vmatpush3.bf16.xpose.msra.mxu1 %v978_v40  ;;  %2366 = vmatprep.mubr.msk.bf16.mxu1 %vm2570_vm0, %v2569_v1 }
 0x175   : > { %2376 = vmatprep.subr.bf16.mxu1 %v2569_v1 }
 0x17b   : > { %2367 = vmatmul.mubr.msk.bf16.vlgmr.msra.gmra.mrb[16].mxu1 %vm601_vm2, %v971_v41 }
 0x17c   : > { %2380 = vmatprep.mubr.msk.bf16.mxu1 %vm2570_vm0, %v2569_v1 }
 0x1cc   : > { %v642_v45 = vpop.f32.mrb[4].mxu1 }
 0x1cd   : > { %v643_v46 = vadd.f32 %v642_v45, %v599_v44  ;;  %v2332_v47 = vpop.f32.mrb[5].mxu1 }
 0x1ce   : > { %v645_v48 = vpop.f32.mrb[6].mxu1 }
 0x1cf   : > { %v2333_v49 = vpop.f32.mrb[7].mxu1  ;;  %v648_v50 = vsel %vm601_vm2, %v643_v46, -inf }
 0x1d0   : > { %649 = vmax.xlane.f32.xlu0 %v648_v50 }
 0x23e   : > { %v763_v60 = vpop.f32.mrb[8].mxu1 }
 0x23f   : > { %v764_v61 = vadd.f32 %v763_v60, %v599_v44  ;;  %v2344_v62 = vpop.f32.mrb[9].mxu1 }
 0x240   : > { %v766_v63 = vpop.f32.mrb[10].mxu1 }
 0x241   : > { %v2345_v0 = vpop.f32.mrb[11].mxu1  ;;  %v769_v2 = vsel %vm601_vm2, %v764_v61, -inf }
 0x242   : > { %770 = vmax.xlane.f32.xlu1 %v769_v2 }
 0x246   : > { %v889_v3 = vpop.f32.mrb[12].mxu1 }
 0x247   : > { %v890_v4 = vadd.f32 %v889_v3, %v599_v44  ;;  %v2356_v8 = vpop.f32.mrb[13].mxu1 }
 0x248   : > { %v892_v9 = vpop.f32.mrb[14].mxu1 }
 0x249   : > { %v2357_v10 = vpop.f32.mrb[15].mxu1  ;;  %v895_v15 = vsel %vm601_vm2, %v890_v4, -inf }
 0x24a   : > { %896 = vmax.xlane.f32.xlu0 %v895_v15 }
 0x24e   : > { %v1014_v16 = vpop.f32.mrb[16].mxu1 }
 0x24f   : > { %v1015_v17 = vadd.f32 %v1014_v16, %v599_v44  ;;  %v2368_v18 = vpop.f32.mrb[17].mxu1 }
 0x250   : > { %v1017_v19 = vpop.f32.mrb[18].mxu1 }
 0x251   : > { %v2369_v20 = vpop.f32.mrb[19].mxu1  ;;  %v1020_v21 = vsel %vm601_vm2, %v1015_v17, -inf }
 0x252   : > { %1021 = vmax.xlane.f32.xlu0 %v1020_v21 }
 0x253   : > { %788 = vrot.lane.b32.xlu1 %v594_v57, %s2572_s26 }
 0x257   : > { %1038 = vrot.lane.b32.xlu1 %v594_v57, %s2573_s29 }
 0x25d   : > { %v650_v22 = vpop.xlane.xlu0 %649 }
 0x25e   : > { %v651_v23 = vmax.f32 %v650_v22, -1e+30 }
 0x260   : > { %v655_v24 = vsub.f32 %v643_v46, %v651_v23 }
 0x262   : > { %v656_v25 = vpack.c.bf16 %v655_v24, %v655_v24 }
 0x264   : > { %v658_v26 = vmul.bf16 1069105081, %v656_v25 }
 0x266   : > { %2508 = vpow.bf16 %v658_v26 }
 0x268   : > { %913 = vrot.lane.b32.xlu0 %v594_v57, %s2571_s25 }
 0x271   : > { %v2509_v27 = vpop.eup %2508 }
 0x272   : > { %2337 = vmatmul.mubr.msk.bf16.vlgmr.msra.gmra.mrb[8].mxu0 %vm601_vm2, %v2509_v27  ;;  %v660_v50 = vunpack.c.l.bf16 %v2509_v27 }
 0x273   : > { %2348 = vmatprep.mubr.msk.bf16.mxu0 %vm2570_vm0, %v2569_v1 }
 0x274   : > { %v661_v53 = vsel %vm601_vm2, %v660_v50, 0.0 }
 0x2cf   : > { %v2756_v28 = vpop.xlane.xlu1 %770 }
 0x2d0   : > { %v772_v29 = vmax.f32 %v2756_v28, -1e+30 }
 0x2d2   : > { %v776_v30 = vsub.f32 %v764_v61, %v772_v29  ;;  %v652_v61 = vsub.f32 -1e+30, %v651_v23  ;;  %v773_v19 = vsub.f32 -1e+30, %v772_v29 }
 0x2d3   : > { %v789_v31 = vpop.permute.xlu1 %788 }
 0x2d4   : > { %v777_v32 = vpack.c.bf16 %v776_v30, %v776_v30  ;;  %v794_v33 = vsel %vm669_vm4, %v789_v31, 0  ;;  %v653_v62 = vmul.f32 1.442695, %v652_v61  ;;  %v774_v20 = vmul.f32 1.442695, %v773_v19 }
 0x2d5   : > { %2347 = vmatpush3.bf16.msra.mxu0 %v794_v33 }
 0x2d6   : > { %v779_v34 = vmul.bf16 1069105081, %v777_v32  ;;  %2358 = vmatprep.subr.bf16.mxu0 %v2569_v1 }
 0x2d7   : > { %v897_v35 = vpop.xlane.xlu0 %896  ;;  %v1039_v52 = vpop.permute.xlu1 %1038 }
 0x2d8   : > { %2510 = vpow.bf16 %v779_v34  ;;  %v898_v36 = vmax.f32 %v897_v35, -1e+30  ;;  %v1044_v55 = vsel %vm669_vm4, %v1039_v52, 0 }
 0x2da   : > { %v902_v37 = vsub.f32 %v890_v4, %v898_v36  ;;  %v899_v21 = vsub.f32 -1e+30, %v898_v36 }
 0x2dc   : > { %v903_v38 = vpack.c.bf16 %v902_v37, %v902_v37  ;;  %v900_v22 = vmul.f32 1.442695, %v899_v21 }
 0x2de   : > { %v905_v39 = vmul.bf16 1069105081, %v903_v38 }
 0x2df   : > { %v1022_v40 = vpop.xlane.xlu0 %1021 }
 0x2e0   : > { %2512 = vpow.bf16 %v905_v39  ;;  %v1023_v41 = vmax.f32 %v1022_v40, -1e+30 }
 0x2e2   : > { %v1027_v42 = vsub.f32 %v1015_v17, %v1023_v41  ;;  %v1024_v23 = vsub.f32 -1e+30, %v1023_v41 }
 0x2e3   : > { %v2511_v43 = vpop.eup %2510  ;;  %v914_v44 = vpop.permute.xlu0 %913 }
 0x2e4   : > { %v1028_v45 = vpack.c.bf16 %v1027_v42, %v1027_v42  ;;  %v919_v46 = vsel %vm669_vm4, %v914_v44, 0  ;;  %2349 = vmatmul.mubr.msk.bf16.vlgmr.msra.gmra.mrb[12].mxu0 %vm601_vm2, %v2511_v43  ;;  %v781_v47 = vunpack.c.l.bf16 %v2511_v43  ;;  %v1025_v25 = vmul.f32 1.442695, %v1024_v23  ;;  %v2494_v44 = vld [vmem:[%s2995_s6 + $0x30] sm:$0xff]  }
 0x2e5   : > { %2359 = vmatpush3.bf16.msra.mxu0 %v919_v46  ;;  %2360 = vmatprep.mubr.msk.bf16.mxu0 %vm2570_vm0, %v2569_v1 }
 0x2e6   : > { %v1030_v48 = vmul.bf16 1069105081, %v1028_v45  ;;  %v782_v49 = vsel %vm601_vm2, %v781_v47, 0.0  ;;  %2370 = vmatprep.subr.bf16.mxu0 %v2569_v1  ;;  %2377 = vmatpush3.bf16.msra.mxu1 %v2494_v44 }
 0x2e7   : > { %783 = vadd.xlane.f32.xlu1 %v782_v49  ;;  %v2495_v49 = vld [vmem:[%s2995_s6 + $0x38] sm:$0xff]   ;;  %2378 = vmatprep.subr.bf16.mxu1 %v2569_v1 }
 0x2e8   : > { %2514 = vpow.bf16 %v1030_v48 }
 0x2e9   : > { %2516 = vpow2.f32 %v653_v62 }
 0x2ea   : > { %2379 = vmatpush3.bf16.msra.mxu1 %v2495_v49 }
 0x2eb   : > { %v2513_v54 = vpop.eup %2512  ;;  %662 = vadd.xlane.f32.xlu1 %v661_v53  ;;  %2392 = vmatprep.subr.bf16.mxu1 %v2569_v1 }
 0x2ec   : > { %2361 = vmatmul.mubr.msk.bf16.vlgmr.msra.gmra.mrb[16].mxu0 %vm601_vm2, %v2513_v54  ;;  %v907_v56 = vunpack.c.l.bf16 %v2513_v54 }
 0x2ed   : > { %2371 = vmatpush3.bf16.msra.mxu0 %v1044_v55  ;;  %2372 = vmatprep.mubr.msk.bf16.mxu0 %vm2570_vm0, %v2569_v1 }
 0x2ee   : > { %v908_v57 = vsel %vm601_vm2, %v907_v56, 0.0  ;;  %2384 = vmatprep.subr.bf16.mxu0 %v2569_v1 }
 0x2ef   : > { %909 = vadd.xlane.f32.xlu0 %v908_v57 }
 0x2f3   : > { %v2515_v58 = vpop.eup %2514 }
 0x2f4   : > { %2373 = vmatmul.mubr.msk.bf16.vlgmr.msra.gmra.mrb[20].mxu0 %vm601_vm2, %v2515_v58  ;;  %v1032_v59 = vunpack.c.l.bf16 %v2515_v58  ;;  %v2517_v63 = vpop.eup %2516 }
 0x2f5   : > { %2388 = vmatprep.mubr.msk.bf16.mxu0 %vm2570_vm0, %v2569_v1  ;;  %v664_v0 = vmul.f32 0.0, %v2517_v63 }
 0x2f6   : > { %v1033_v60 = vsel %vm601_vm2, %v1032_v59, 0.0 }
 0x2f7   : > { %1034 = vadd.xlane.f32.xlu0 %v1033_v60 }
 0x345   : > { %v707_v2 = vpop.f32.mrb[8].mxu0 }
 0x346   : > { %v713_v3 = vadd.f32 %v707_v2, %v664_v0  ;;  %v2338_v4 = vpop.f32.mrb[9].mxu0  ;;  %v1104_v2 = vsub.s32 3, %v2679_v11 }
 0x347   : > { %v710_v8 = vpop.f32.mrb[10].mxu0 }
 0x348   : > { %v2339_v9 = vpop.f32.mrb[11].mxu0 }
 0x374   : > { %v784_v10 = vpop.xlane.xlu1 %783 }
 0x378   : > { %v663_v15 = vpop.xlane.xlu1 %662 }
 0x379   : > { %v665_v16 = vadd.f32 %v664_v0, %v663_v15 }
 0x37b   : > { %2518 = vrcp.f32 %v665_v16 }
 0x37c   : > { %2520 = vpow2.f32 %v774_v20  ;;  %v910_v31 = vpop.xlane.xlu0 %909 }
 0x37d   : > { %2522 = vpow2.f32 %v900_v22 }
 0x37e   : > { %2524 = vpow2.f32 %v1025_v25 }
 0x384   : > { %v1035_v29 = vpop.xlane.xlu0 %1034 }
 0x385   : > { %v2519_v17 = vpop.eup %2518 }
 0x386   : > { %v715_v18 = vmul.f32 %v2519_v17, %v713_v3  ;;  %v2521_v24 = vpop.eup %2520  ;;  %v1105_v3 = vrot.slane %v2688_v14, %v1104_v2 }
 0x387   : > { %v785_v26 = vmul.f32 0.0, %v2521_v24  ;;  %v2523_v30 = vpop.eup %2522  ;;  %v2242_v24 = vld [vmem:[%s375_s13] sm:$0xff]  }
 0x388   : > { %716 = vst.msk [vmem:[#allocation2] sm:$0xff] %vm601_vm2, %v715_v18  ;;  %v911_v32 = vmul.f32 0.0, %v2523_v30  ;;  %v2525_v34 = vpop.eup %2524  ;;  %v2496_v18 = vld [vmem:[%s2995_s6 + $0x50] sm:$0xff]   ;;  %v2244_v30 = vunpack.c.h.bf16 %v2242_v24 }
 0x389   : > { %v786_v27 = vadd.f32 %v785_v26, %v784_v10  ;;  %v1036_v38 = vmul.f32 0.0, %v2525_v34 }
 0x38a   : > { %v912_v33 = vadd.f32 %v911_v32, %v910_v31  ;;  %v2497_v31 = vld [vmem:[%s2995_s6 + $0x58] sm:$0xff]  }
 0x38b   : > { %2526 = vrcp.f32 %v786_v27  ;;  %v1037_v42 = vadd.f32 %v1036_v38, %v1035_v29  ;;  %v2243_v27 = vunpack.c.l.bf16 %v2242_v24  ;;  %v2499_v29 = vld [vmem:[%s2995_s6 + $0x48] sm:$0xff]  }
 0x38c   : > { %2528 = vrcp.f32 %v912_v33 }
 0x38d   : > { %2530 = vrcp.f32 %v1037_v42 }
 0x395   : > { %v2527_v36 = vpop.eup %2526 }
 0x396   : > { %v2529_v47 = vpop.eup %2528 }
 0x397   : > { %v2531_v56 = vpop.eup %2530 }
 0x3b7   : > { %v830_v28 = vpop.f32.mrb[12].mxu0 }
 0x3b8   : > { %v836_v35 = vadd.f32 %v830_v28, %v785_v26  ;;  %v2350_v37 = vpop.f32.mrb[13].mxu0  ;;  %v2498_v28 = vld [vmem:[%s2995_s6 + $0x40] sm:$0xff]  }
 0x3b9   : > { %v833_v39 = vpop.f32.mrb[14].mxu0  ;;  %2385 = vmatpush3.bf16.msra.mxu0 %v2498_v28 }
 0x3ba   : > { %v838_v40 = vmul.f32 %v2527_v36, %v836_v35  ;;  %v2351_v41 = vpop.f32.mrb[15].mxu0  ;;  %2386 = vmatprep.subr.bf16.mxu0 %v2569_v1 }
 0x3bc   : > { %840 = vrot.lane.b32.xlu0 %v838_v40, %s2574_s16 }
 0x3bd   : > { %2387 = vmatpush3.bf16.msra.mxu0 %v2499_v29 }
 0x3be   : > { %2400 = vmatprep.subr.bf16.mxu0 %v2569_v1 }
 0x3bf   : > { %v955_v43 = vpop.f32.mrb[16].mxu0 }
 0x3c0   : > { %v961_v45 = vadd.f32 %v955_v43, %v911_v32  ;;  %v2362_v46 = vpop.f32.mrb[17].mxu0 }
 0x3c1   : > { %v958_v48 = vpop.f32.mrb[18].mxu0 }
 0x3c2   : > { %v963_v50 = vmul.f32 %v2529_v47, %v961_v45  ;;  %v2363_v52 = vpop.f32.mrb[19].mxu0 }
 0x3c4   : > { %965 = vrot.lane.b32.xlu1 %v963_v50, %s2575_s21 }
 0x3c7   : > { %v1080_v53 = vpop.f32.mrb[20].mxu0 }
 0x3c8   : > { %v1086_v54 = vadd.f32 %v1080_v53, %v1036_v38  ;;  %v2374_v55 = vpop.f32.mrb[21].mxu0  ;;  %v2841_v38 = vld [vmem:[%s2996_s7 + $0x8] sm:$0xff] }
 0x3c9   : > { %v1083_v57 = vpop.f32.mrb[22].mxu0  ;;  %v1179_v39 = vrot.slane %v2841_v38, %v474_v12  ;;  %v1184_v41 = vrot.slane %v2841_v38, %v537_v51  ;;  %v1269_v12 = vsub.s32 5, %v2679_v11 }
 0x3ca   : > { %v1088_v58 = vmul.f32 %v2531_v56, %v1086_v54  ;;  %v2375_v59 = vpop.f32.mrb[23].mxu0 }
 0x3cb   : > { %v1270_v47 = vrot.slane %v2688_v14, %v1269_v12 }
 0x3cc   : > { %1090 = vrot.lane.b32.xlu1 %v1088_v58, %s2576_s22 }
 0x42e   : > { %v841_v60 = vpop.permute.xlu0 %840 }
 0x42f   : > { %844 = vst.msk [vmem:[#allocation2] sm:$0xff] %vm843_vm5, %v841_v60 }
 0x436   : > { %v966_v61 = vpop.permute.xlu1 %965 }
 0x437   : > { %969 = vst.msk [vmem:[#allocation2] sm:$0xff] %vm968_vm6, %v966_v61 }
 0x43e   : > { %v1091_v62 = vpop.permute.xlu1 %1090 }
 0x43f   : > { %1094 = vst.msk [vmem:[#allocation2] sm:$0xff] %vm1093_vm7, %v1091_v62 }
 0x446   : > { %v1095_v63 = vld [vmem:[#allocation2] sm:$0xff] }
 0x447   : > { %v1096_v0 = vpack.c.bf16 %v1095_v63, %v1095_v63 }
 0x449   : > { %2381 = vmatmul.mubr.msk.bf16.vlgmr.msra.gmra.mrb[20].mxu1 %vm422_vm1, %v1096_v0  ;;  %v2500_v0 = vld [vmem:[%s2995_s6 + $0x60] sm:$0xff]  }
 0x44a   : > { %2396 = vmatprep.mubr.msk.bf16.mxu1 %vm2570_vm0, %v2569_v1  ;;  %2393 = vmatpush3.bf16.msra.mxu1 %v2496_v18  ;;  %v392_v18 = vld [vmem:[%s381_s17] sm:$0x1] }
 0x44b   : > { %2394 = vmatprep.subr.bf16.mxu1 %v2569_v1  ;;  %vm393_vm8 = vcmp.ne.f32.partialorder %v392_v18, 0.0 }
 0x44e   : > { %2395 = vmatpush3.bf16.msra.mxu1 %v2497_v31 }
 0x44f   : > { %2408 = vmatprep.subr.bf16.mxu1 %v2569_v1 }
 0x51c   : > { %v1155_v4 = vpop.f32.mrb[20].mxu1 }
 0x51d   : > { %v1156_v8 = vadd.f32 %v1155_v4, %v1105_v3  ;;  %v2382_v9 = vpop.f32.mrb[21].mxu1  ;;  %v2501_v3 = vld [vmem:[%s2995_s6 + $0x68] sm:$0xff]  }
 0x51e   : > { %v1158_v10 = vpop.f32.mrb[22].mxu1 }
 0x51f   : > { %v2383_v15 = vpop.f32.mrb[23].mxu1  ;;  %v1161_v16 = vadd.f32 %v1156_v8, %v2664_v5  ;;  %v2819_v5 = vld [vmem:[%s366_s10] sm:$0xff]  }
 0x520   : > { %v1187_v25 = vunpack.c.l.bf16 %v2819_v5  ;;  %v1188_v26 = vunpack.c.h.bf16 %v2819_v5 }
 0x521   : > { %v1162_v17 = vsel %vm422_vm1, %v1161_v16, 0.0 }
 0x522   : > { %1163 = vadd.xlane.f32.xlu0 %v1162_v17  ;;  %v1193_v32 = vadd.f32 %v2243_v27, %v1187_v25  ;;  %v1194_v33 = vadd.f32 %v2244_v30, %v1188_v26  ;;  %v1335_v26 = vsub.s32 6, %v2679_v11 }
 0x524   : > { %v1261_v34 = vpack.c.bf16 %v1194_v33, %v1193_v32  ;;  %v1336_v30 = vrot.slane %v2688_v14, %v1335_v26 }
 0x526   : > { %2397 = vmatmul.mubr.msk.bf16.vlgmr.msra.gmra.mrb[24].mxu1 %vm422_vm1, %v1261_v34 }
 0x527   : > { %2410 = vmatprep.mubr.msk.bf16.mxu1 %vm2570_vm0, %v2569_v1 }
 0x5af   : > { %v1164_v19 = vpop.xlane.xlu0 %1163 }
 0x5b0   : > { %v1166_v20 = vmul.f32 0.03125, %v1164_v19  ;;  %v394_v19 = vsel %vm393_vm8, -1e+30, %v2569_v1 }
 0x5b2   : > { %v1167_v21 = vsub.f32 %v1161_v16, %v1166_v20  ;;  %v1403_v20 = vrot.slane %v394_v19, %v2683_v13 }
 0x5b4   : > { %v1168_v22 = vmul.f32 %v1167_v21, %v1167_v21 }
 0x5b6   : > { %v1169_v23 = vsel %vm422_vm1, %v1168_v22, 0.0 }
 0x5b7   : > { %1170 = vadd.xlane.f32.xlu1 %v1169_v23 }
 0x5f9   : > { %v1320_v48 = vpop.f32.mrb[24].mxu1 }
 0x5fa   : > { %v1321_v51 = vadd.f32 %v1320_v48, %v1270_v47  ;;  %v2398_v49 = vpop.f32.mrb[25].mxu1 }
 0x5fb   : > { %v1323_v50 = vpop.f32.mrb[26].mxu1 }
 0x5fc   : > { %v1324_v52 = vadd.f32 %v1323_v50, %v1270_v47  ;;  %v2399_v53 = vpop.f32.mrb[27].mxu1 }
 0x5fe   : > { %v1327_v54 = vpack.c.bf16 %v1324_v52, %v1321_v51 }
 0x600   : > { %1521 = vrot.lane.b32.xlu0 %v1327_v54, %s2572_s26  ;;  %v1409_v6 = vsel %vm601_vm2, %v1327_v54, 0 }
 0x601   : > { %2409 = vmatpush3.bf16.xpose.msra.mxu1 %v1409_v6 }
 0x602   : > { %2420 = vmatprep.subr.bf16.mxu1 %v2569_v1 }
 0x604   : > { %1644 = vrot.lane.b32.xlu0 %v1327_v54, %s2571_s25 }
 0x608   : > { %1766 = vrot.lane.b32.xlu0 %v1327_v54, %s2573_s29 }
 0x644   : > { %v1171_v35 = vpop.xlane.xlu1 %1170 }
 0x645   : > { %v1172_v37 = vmul.f32 0.03125, %v1171_v35 }
 0x647   : > { %v1173_v36 = vadd.f32 1e-05, %v1172_v37 }
 0x649   : > { %2532 = vrsqrt.f32 %v1173_v36 }
 0x653   : > { %v2533_v40 = vpop.eup %2532 }
 0x654   : > { %v1175_v42 = vmul.f32 %v2533_v40, %v1167_v21 }
 0x656   : > { %v1180_v43 = vmul.f32 %v1179_v39, %v1175_v42 }
 0x658   : > { %v2849_v44 = vadd.f32 %v1184_v41, %v1180_v43 }
 0x65a   : > { %v1186_v45 = vadd.f32 %v2849_v44, %v397_v7  ;;  %v1203_v7 = vsub.s32 4, %v2679_v11 }
 0x65c   : > { %v1195_v46 = vpack.c.bf16 %v1186_v45, %v1186_v45  ;;  %v1204_v55 = vrot.slane %v2688_v14, %v1203_v7 }
 0x65e   : > { %2389 = vmatmul.mubr.msk.bf16.vlgmr.msra.gmra.mrb[24].mxu0 %vm422_vm1, %v1195_v46 }
 0x65f   : > { %2404 = vmatprep.mubr.msk.bf16.mxu0 %vm2570_vm0, %v2569_v1  ;;  %2401 = vmatpush3.bf16.msra.mxu0 %v2500_v0 }
 0x660   : > { %2402 = vmatprep.subr.bf16.mxu0 %v2569_v1 }
 0x663   : > { %2403 = vmatpush3.bf16.msra.mxu0 %v2501_v3 }
 0x664   : > { %2414 = vmatprep.subr.bf16.mxu0 %v2569_v1 }
 0x666   : > { %2405 = vmatmul.mubr.msk.bf16.vlgmr.msra.gmra.mrb[28].mxu0 %vm422_vm1, %v2819_v5 }
 0x667   : > { %2416 = vmatprep.mubr.msk.bf16.mxu0 %vm2570_vm0, %v2569_v1 }
 0x672   : > { %v1522_v60 = vpop.permute.xlu0 %1521 }
 0x673   : > { %v1527_v63 = vsel %vm601_vm2, %v1522_v60, 0 }
 0x676   : > { %v1645_v4 = vpop.permute.xlu0 %1644 }
 0x677   : > { %v1650_v9 = vsel %vm601_vm2, %v1645_v4, 0 }
 0x67a   : > { %v1767_v10 = vpop.permute.xlu0 %1766 }
 0x67b   : > { %v1772_v16 = vsel %vm601_vm2, %v1767_v10, 0 }
 0x731   : > { %v1254_v56 = vpop.f32.mrb[24].mxu0 }
 0x732   : > { %v1255_v57 = vadd.f32 %v1254_v56, %v1204_v55  ;;  %v2390_v58 = vpop.f32.mrb[25].mxu0 }
 0x733   : > { %v1257_v59 = vpop.f32.mrb[26].mxu0 }
 0x734   : > { %v1260_v61 = vpack.c.bf16 %v1255_v57, %v1255_v57  ;;  %v2391_v62 = vpop.f32.mrb[27].mxu0 }
 0x736   : > { %1518 = vrot.lane.b32.xlu1 %v1260_v61, %s2572_s26  ;;  %2411 = vmatmul.mubr.msk.bf16.vlgmr.msra.gmra.mrb[28].mxu1 %vm601_vm2, %v1260_v61 }
 0x737   : > { %2421 = vmatpush3.bf16.xpose.msra.mxu1 %v1527_v63  ;;  %2422 = vmatprep.mubr.msk.bf16.mxu1 %vm2570_vm0, %v2569_v1 }
 0x738   : > { %2432 = vmatprep.subr.bf16.mxu1 %v2569_v1 }
 0x739   : > { %v1391_v27 = vpop.f32.mrb[28].mxu0 }
 0x73a   : > { %1642 = vrot.lane.b32.xlu1 %v1260_v61, %s2571_s25  ;;  %v2406_v31 = vpop.f32.mrb[29].mxu0  ;;  %v1392_v33 = vadd.f32 %v1391_v27, %v1336_v30 }
 0x73b   : > { %v1394_v32 = vpop.f32.mrb[30].mxu0 }
 0x73c   : > { %v1395_v34 = vadd.f32 %v1394_v32, %v1336_v30  ;;  %v2407_v28 = vpop.f32.mrb[31].mxu0 }
 0x73e   : > { %1764 = vrot.lane.b32.xlu1 %v1260_v61, %s2573_s29  ;;  %v1398_v29 = vpack.c.bf16 %v1395_v34, %v1392_v33 }
 0x740   : > { %2415 = vmatpush3.bf16.msra.mxu0 %v1398_v29 }
 0x741   : > { %2426 = vmatprep.subr.bf16.mxu0 %v2569_v1 }
 0x7a8   : > { %v1519_v8 = vpop.permute.xlu1 %1518 }
 0x7a9   : > { %2423 = vmatmul.mubr.msk.bf16.vlgmr.msra.gmra.mrb[32].mxu1 %vm601_vm2, %v1519_v8 }
 0x7aa   : > { %2433 = vmatpush3.bf16.xpose.msra.mxu1 %v1650_v9  ;;  %2434 = vmatprep.mubr.msk.bf16.mxu1 %vm2570_vm0, %v2569_v1 }
 0x7ab   : > { %2444 = vmatprep.subr.bf16.mxu1 %v2569_v1 }
 0x7ac   : > { %v1643_v15 = vpop.permute.xlu1 %1642 }
 0x7b0   : > { %v1765_v17 = vpop.permute.xlu1 %1764 }
 0x7b1   : > { %2435 = vmatmul.mubr.msk.bf16.vlgmr.msra.gmra.mrb[36].mxu1 %vm601_vm2, %v1643_v15 }
 0x7b2   : > { %2445 = vmatpush3.bf16.xpose.msra.mxu1 %v1772_v16  ;;  %2446 = vmatprep.mubr.msk.bf16.mxu1 %vm2570_vm0, %v2569_v1 }
 0x7b3   : > { %2456 = vmatprep.subr.bf16.mxu1 %v2569_v1 }
 0x7b9   : > { %2447 = vmatmul.mubr.msk.bf16.vlgmr.msra.gmra.mrb[40].mxu1 %vm601_vm2, %v1765_v17 }
 0x7ba   : > { %2460 = vmatprep.mubr.msk.bf16.mxu1 %vm2570_vm0, %v2569_v1 }
 0x809   : > { %v1445_v21 = vpop.f32.mrb[28].mxu1 }
 0x80a   : > { %v1446_v22 = vadd.f32 %v1445_v21, %v1403_v20  ;;  %v2412_v23 = vpop.f32.mrb[29].mxu1 }
 0x80b   : > { %v1448_v5 = vpop.f32.mrb[30].mxu1 }
 0x80c   : > { %v2413_v24 = vpop.f32.mrb[31].mxu1  ;;  %v1452_v25 = vsel %vm1451_vm9, %v1446_v22, -inf }
 0x80d   : > { %1453 = vmax.xlane.f32.xlu0 %v1452_v25 }
 0x87c   : > { %v1563_v35 = vpop.f32.mrb[32].mxu1 }
 0x87d   : > { %v1564_v37 = vadd.f32 %v1563_v35, %v1403_v20  ;;  %v2424_v36 = vpop.f32.mrb[33].mxu1 }
 0x87e   : > { %v1566_v39 = vpop.f32.mrb[34].mxu1 }
 0x87f   : > { %v2425_v40 = vpop.f32.mrb[35].mxu1  ;;  %v1569_v41 = vsel %vm1451_vm9, %v1564_v37, -inf }
 0x880   : > { %1570 = vmax.xlane.f32.xlu1 %v1569_v41 }
 0x884   : > { %v1686_v42 = vpop.f32.mrb[36].mxu1 }
 0x885   : > { %v1687_v43 = vadd.f32 %v1686_v42, %v1403_v20  ;;  %v2436_v14 = vpop.f32.mrb[37].mxu1 }
 0x886   : > { %v1689_v45 = vpop.f32.mrb[38].mxu1 }
 0x887   : > { %v2437_v46 = vpop.f32.mrb[39].mxu1  ;;  %v1692_v12 = vsel %vm1451_vm9, %v1687_v43, -inf }
 0x888   : > { %1693 = vmax.xlane.f32.xlu0 %v1692_v12 }
 0x88c   : > { %v1808_v47 = vpop.f32.mrb[40].mxu1 }
 0x88d   : > { %v1809_v48 = vadd.f32 %v1808_v47, %v1403_v20  ;;  %v2448_v51 = vpop.f32.mrb[41].mxu1 }
 0x88e   : > { %v1811_v49 = vpop.f32.mrb[42].mxu1 }
 0x88f   : > { %v2449_v50 = vpop.f32.mrb[43].mxu1  ;;  %v1814_v52 = vsel %vm1451_vm9, %v1809_v48, -inf }
 0x890   : > { %1815 = vmax.xlane.f32.xlu0 %v1814_v52 }
 0x891   : > { %1588 = vrot.lane.b32.xlu1 %v1398_v29, %s2572_s26 }
 0x895   : > { %1832 = vrot.lane.b32.xlu1 %v1398_v29, %s2573_s29 }
 0x89a   : > { %v1454_v53 = vpop.xlane.xlu0 %1453 }
 0x89b   : > { %v1455_v54 = vmax.f32 %v1454_v53, -1e+30 }
 0x89d   : > { %v1459_v6 = vsub.f32 %v1446_v22, %v1455_v54  ;;  %v1456_v33 = vsub.f32 -1e+30, %v1455_v54 }
 0x89f   : > { %v1460_v55 = vpack.c.bf16 %v1459_v6, %v1459_v6  ;;  %v1457_v34 = vmul.f32 1.442695, %v1456_v33 }
 0x8a1   : > { %v1462_v56 = vmul.bf16 1069105081, %v1460_v55 }
 0x8a3   : > { %2534 = vpow.bf16 %v1462_v56 }
 0x8a6   : > { %1710 = vrot.lane.b32.xlu0 %v1398_v29, %s2571_s25 }
 0x8ae   : > { %v2535_v57 = vpop.eup %2534 }
 0x8af   : > { %2417 = vmatmul.mubr.msk.bf16.vlgmr.msra.gmra.mrb[32].mxu0 %vm1451_vm9, %v2535_v57  ;;  %v1464_v23 = vunpack.c.l.bf16 %v2535_v57 }
 0x8b0   : > { %2428 = vmatprep.mubr.msk.bf16.mxu0 %vm2570_vm0, %v2569_v1 }
 0x8b1   : > { %v1465_v5 = vsel %vm1451_vm9, %v1464_v23, 0.0 }
 0x90d   : > { %v2920_v58 = vpop.xlane.xlu1 %1570 }
 0x90e   : > { %v1572_v59 = vmax.f32 %v2920_v58, -1e+30 }
 0x910   : > { %v1576_v60 = vsub.f32 %v1564_v37, %v1572_v59  ;;  %v1573_v46 = vsub.f32 -1e+30, %v1572_v59 }
 0x911   : > { %v1589_v61 = vpop.permute.xlu1 %1588 }
 0x912   : > { %v1577_v62 = vpack.c.bf16 %v1576_v60, %v1576_v60  ;;  %2427 = vmatpush3.bf16.msra.mxu0 %v1589_v61  ;;  %v1574_v12 = vmul.f32 1.442695, %v1573_v46 }
 0x913   : > { %2438 = vmatprep.subr.bf16.mxu0 %v2569_v1 }
 0x914   : > { %v1579_v63 = vmul.bf16 1069105081, %v1577_v62 }
 0x915   : > { %v1694_v0 = vpop.xlane.xlu0 %1693  ;;  %v1833_v25 = vpop.permute.xlu1 %1832 }
 0x916   : > { %2536 = vpow.bf16 %v1579_v63  ;;  %v1695_v3 = vmax.f32 %v1694_v0, -1e+30 }
 0x918   : > { %v1699_v4 = vsub.f32 %v1687_v43, %v1695_v3  ;;  %v1696_v47 = vsub.f32 -1e+30, %v1695_v3 }
 0x91a   : > { %v1700_v8 = vpack.c.bf16 %v1699_v4, %v1699_v4 }
 0x91c   : > { %v1702_v9 = vmul.bf16 1069105081, %v1700_v8 }
 0x91d   : > { %v1816_v10 = vpop.xlane.xlu0 %1815 }
 0x91e   : > { %2538 = vpow.bf16 %v1702_v9  ;;  %v1817_v15 = vmax.f32 %v1816_v10, -1e+30  ;;  %v2503_v10 = vld [vmem:[%s2995_s6 + $0x70] sm:$0xff]  }
 0x91f   : > { %2457 = vmatpush3.bf16.msra.mxu1 %v2503_v10 }
 0x920   : > { %v1821_v16 = vsub.f32 %v1809_v48, %v1817_v15  ;;  %v1697_v48 = vmul.f32 1.442695, %v1696_v47  ;;  %v1818_v51 = vsub.f32 -1e+30, %v1817_v15  ;;  %2458 = vmatprep.subr.bf16.mxu1 %v2569_v1 }
 0x921   : > { %v2537_v17 = vpop.eup %2536  ;;  %v1711_v18 = vpop.permute.xlu0 %1710 }
 0x922   : > { %v1822_v19 = vpack.c.bf16 %v1821_v16, %v1821_v16  ;;  %2429 = vmatmul.mubr.msk.bf16.vlgmr.msra.gmra.mrb[36].mxu0 %vm1451_vm9, %v2537_v17  ;;  %v1581_v20 = vunpack.c.l.bf16 %v2537_v17  ;;  %v1819_v50 = vmul.f32 1.442695, %v1818_v51 }
 0x923   : > { %2439 = vmatpush3.bf16.msra.mxu0 %v1711_v18  ;;  %2440 = vmatprep.mubr.msk.bf16.mxu0 %vm2570_vm0, %v2569_v1 }
 0x924   : > { %v1824_v21 = vmul.bf16 1069105081, %v1822_v19  ;;  %v1582_v22 = vsel %vm1451_vm9, %v1581_v20, 0.0  ;;  %2450 = vmatprep.subr.bf16.mxu0 %v2569_v1  ;;  %v2504_v19 = vld [vmem:[%s2995_s6 + $0x78] sm:$0xff]  }
 0x925   : > { %1583 = vadd.xlane.f32.xlu1 %v1582_v22  ;;  %2459 = vmatpush3.bf16.msra.mxu1 %v2504_v19 }
 0x926   : > { %2540 = vpow.bf16 %v1824_v21 }
 0x927   : > { %2542 = vpow2.f32 %v1457_v34 }
 0x929   : > { %v2539_v24 = vpop.eup %2538  ;;  %1466 = vadd.xlane.f32.xlu1 %v1465_v5 }
 0x92a   : > { %2441 = vmatmul.mubr.msk.bf16.vlgmr.msra.gmra.mrb[40].mxu0 %vm1451_vm9, %v2539_v24  ;;  %v1704_v26 = vunpack.c.l.bf16 %v2539_v24 }
 0x92b   : > { %2451 = vmatpush3.bf16.msra.mxu0 %v1833_v25  ;;  %2452 = vmatprep.mubr.msk.bf16.mxu0 %vm2570_vm0, %v2569_v1 }
 0x92c   : > { %v1705_v27 = vsel %vm1451_vm9, %v1704_v26, 0.0  ;;  %2464 = vmatprep.subr.bf16.mxu0 %v2569_v1  ;;  %v2505_v26 = vld [vmem:[%s2995_s6 + $0x80] sm:$0xff]  }
 0x92d   : > { %1706 = vadd.xlane.f32.xlu0 %v1705_v27 }
 0x931   : > { %v2541_v30 = vpop.eup %2540 }
 0x932   : > { %2453 = vmatmul.mubr.msk.bf16.vlgmr.msra.gmra.mrb[44].mxu0 %vm1451_vm9, %v2541_v30  ;;  %v1826_v31 = vunpack.c.l.bf16 %v2541_v30  ;;  %v2543_v28 = vpop.eup %2542 }
 0x933   : > { %2468 = vmatprep.mubr.msk.bf16.mxu0 %vm2570_vm0, %v2569_v1  ;;  %v1468_v29 = vmul.f32 0.0, %v2543_v28  ;;  %2465 = vmatpush3.bf16.msra.mxu0 %v2505_v26 }
 0x934   : > { %v1827_v32 = vsel %vm1451_vm9, %v1826_v31, 0.0  ;;  %2466 = vmatprep.subr.bf16.mxu0 %v2569_v1  ;;  %v1895_v1 = vsub.s32 7, %v2679_v11 }
 0x935   : > { %1828 = vadd.xlane.f32.xlu0 %v1827_v32 }
 0x982   : > { %v1507_v35 = vpop.f32.mrb[32].mxu0 }
 0x983   : > { %v1513_v37 = vadd.f32 %v1507_v35, %v1468_v29  ;;  %v2418_v36 = vpop.f32.mrb[33].mxu0  ;;  %v2560_v35 = vld [vmem:[%s2996_s7] sm:$0xff] }
 0x984   : > { %v1510_v39 = vpop.f32.mrb[34].mxu0 }
 0x985   : > { %v2419_v40 = vpop.f32.mrb[35].mxu0 }
 0x9b2   : > { %v1584_v41 = vpop.xlane.xlu1 %1583 }
 0x9b6   : > { %v1467_v42 = vpop.xlane.xlu1 %1466 }
 0x9b7   : > { %v1469_v43 = vadd.f32 %v1468_v29, %v1467_v42  ;;  %v2506_v29 = vld [vmem:[%s2995_s6 + $0x88] sm:$0xff]  }
 0x9b8   : > { %2467 = vmatpush3.bf16.msra.mxu0 %v2506_v29 }
 0x9b9   : > { %2544 = vrcp.f32 %v1469_v43 }
 0x9ba   : > { %2546 = vpow2.f32 %v1574_v12  ;;  %v1707_v6 = vpop.xlane.xlu0 %1706 }
 0x9bb   : > { %2548 = vpow2.f32 %v1697_v48 }
 0x9bc   : > { %2550 = vpow2.f32 %v1819_v50 }
 0x9c2   : > { %v1829_v59 = vpop.xlane.xlu0 %1828 }
 0x9c3   : > { %v2545_v14 = vpop.eup %2544 }
 0x9c4   : > { %v1515_v45 = vmul.f32 %v2545_v14, %v1513_v37  ;;  %v2547_v49 = vpop.eup %2546  ;;  %v1896_v37 = vrot.slane %v2560_v35, %v1895_v1  ;;  %v1961_v14 = vrot.slane %v2841_v38, %v2683_v13 }
 0x9c5   : > { %v1585_v52 = vmul.f32 0.0, %v2547_v49  ;;  %v2549_v54 = vpop.eup %2548 }
 0x9c6   : > { %1516 = vst.msk [vmem:[#allocation2] sm:$0xff] %vm601_vm2, %v1515_v45  ;;  %v1708_v55 = vmul.f32 0.0, %v2549_v54  ;;  %v2551_v57 = vpop.eup %2550 }
 0x9c7   : > { %v1586_v53 = vadd.f32 %v1585_v52, %v1584_v41  ;;  %v1830_v63 = vmul.f32 0.0, %v2551_v57  ;;  %v2034_v57 = vrot.slane %v2841_v38, %v1104_v2 }
 0x9c8   : > { %v1709_v56 = vadd.f32 %v1708_v55, %v1707_v6 }
 0x9c9   : > { %2552 = vrcp.f32 %v1586_v53  ;;  %v1831_v8 = vadd.f32 %v1830_v63, %v1829_v59 }
 0x9ca   : > { %2554 = vrcp.f32 %v1709_v56 }
 0x9cb   : > { %2556 = vrcp.f32 %v1831_v8 }
 0x9d3   : > { %v2553_v62 = vpop.eup %2552 }
 0x9d4   : > { %v2555_v17 = vpop.eup %2554 }
 0x9d5   : > { %v2557_v24 = vpop.eup %2556 }
 0x9f5   : > { %v1628_v58 = vpop.f32.mrb[36].mxu0 }
 0x9f6   : > { %v1634_v60 = vadd.f32 %v1628_v58, %v1585_v52  ;;  %v2430_v61 = vpop.f32.mrb[37].mxu0  ;;  %v2039_v58 = vrot.slane %v2841_v38, %v1203_v7 }
 0x9f7   : > { %v1631_v0 = vpop.f32.mrb[38].mxu0 }
 0x9f8   : > { %v1636_v3 = vmul.f32 %v2553_v62, %v1634_v60  ;;  %v2431_v4 = vpop.f32.mrb[39].mxu0 }
 0x9fa   : > { %1638 = vrot.lane.b32.xlu0 %v1636_v3, %s2574_s16 }
 0x9fd   : > { %v1750_v9 = vpop.f32.mrb[40].mxu0 }
 0x9fe   : > { %v1756_v15 = vadd.f32 %v1750_v9, %v1708_v55  ;;  %v2442_v16 = vpop.f32.mrb[41].mxu0 }
 0x9ff   : > { %v1753_v18 = vpop.f32.mrb[42].mxu0 }
 0xa00   : > { %v1758_v20 = vmul.f32 %v2555_v17, %v1756_v15  ;;  %v2443_v21 = vpop.f32.mrb[43].mxu0 }
 0xa02   : > { %1760 = vrot.lane.b32.xlu1 %v1758_v20, %s2575_s21 }
 0xa05   : > { %v1872_v22 = vpop.f32.mrb[44].mxu0 }
 0xa06   : > { %v1878_v23 = vadd.f32 %v1872_v22, %v1830_v63  ;;  %v2454_v5 = vpop.f32.mrb[45].mxu0 }
 0xa07   : > { %v1875_v25 = vpop.f32.mrb[46].mxu0 }
 0xa08   : > { %v1880_v27 = vmul.f32 %v2557_v24, %v1878_v23  ;;  %v2455_v30 = vpop.f32.mrb[47].mxu0 }
 0xa0a   : > { %1882 = vrot.lane.b32.xlu1 %v1880_v27, %s2576_s22 }
 0xa6c   : > { %v1639_v31 = vpop.permute.xlu0 %1638 }
 0xa6d   : > { %1641 = vst.msk [vmem:[#allocation2] sm:$0xff] %vm843_vm5, %v1639_v31 }
 0xa74   : > { %v1761_v32 = vpop.permute.xlu1 %1760 }
 0xa75   : > { %1763 = vst.msk [vmem:[#allocation2] sm:$0xff] %vm968_vm6, %v1761_v32 }
 0xa7c   : > { %v1883_v33 = vpop.permute.xlu1 %1882 }
 0xa7d   : > { %1885 = vst.msk [vmem:[#allocation2] sm:$0xff] %vm1093_vm7, %v1883_v33 }
 0xa84   : > { %v1886_v34 = vld [vmem:[#allocation2] sm:$0xff] }
 0xa85   : > { %v1887_v28 = vpack.c.bf16 %v1886_v34, %v1886_v34 }
 0xa87   : > { %2461 = vmatmul.mubr.msk.bf16.vlgmr.msra.gmra.mrb[44].mxu1 %vm422_vm1, %v1887_v28 }
 0xb5a   : > { %v1946_v36 = vpop.f32.mrb[44].mxu1 }
 0xb5b   : > { %v1947_v39 = vadd.f32 %v1946_v36, %v1896_v37  ;;  %v2462_v40 = vpop.f32.mrb[45].mxu1 }
 0xb5c   : > { %v1949_v41 = vpop.f32.mrb[46].mxu1 }
 0xb5d   : > { %v1952_v42 = vpack.c.bf16 %v1947_v39, %v1947_v39  ;;  %v2463_v43 = vpop.f32.mrb[47].mxu1 }
 0xb5f   : > { %2469 = vmatmul.mubr.msk.bf16.vlgmr.msra.gmra.mrb[48].mxu0 %vm422_vm1, %v1952_v42 }
 0xc32   : > { %v2011_v45 = vpop.f32.mrb[48].mxu0 }
 0xc33   : > { %v2012_v46 = vadd.f32 %v2011_v45, %v1961_v14  ;;  %v2470_v12 = vpop.f32.mrb[49].mxu0 }
 0xc34   : > { %v2014_v47 = vpop.f32.mrb[50].mxu0 }
 0xc35   : > { %v2471_v48 = vpop.f32.mrb[51].mxu0  ;;  %v2017_v51 = vadd.f32 %v2012_v46, %v2849_v44 }
 0xc37   : > { %v2018_v49 = vsel %vm422_vm1, %v2017_v51, 0.0 }
 0xc38   : > { %2019 = vadd.xlane.f32.xlu0 %v2018_v49 }
 0xcc5   : > { %v2020_v50 = vpop.xlane.xlu0 %2019 }
 0xcc6   : > { %v2021_v52 = vmul.f32 0.03125, %v2020_v50 }
 0xcc8   : > { %v2022_v53 = vsub.f32 %v2017_v51, %v2021_v52 }
 0xcca   : > { %v2023_v54 = vmul.f32 %v2022_v53, %v2022_v53 }
 0xccc   : > { %v2024_v6 = vsel %vm422_vm1, %v2023_v54, 0.0 }
 0xccd   : > { %2025 = vadd.xlane.f32.xlu1 %v2024_v6 }
 0xd5a   : > { %v2026_v55 = vpop.xlane.xlu1 %2025 }
 0xd5b   : > { %v2027_v13 = vmul.f32 0.03125, %v2026_v55 }
 0xd5d   : > { %v2028_v56 = vadd.f32 1e-05, %v2027_v13 }
 0xd5f   : > { %2558 = vrsqrt.f32 %v2028_v56 }
 0xd69   : > { %v2559_v44 = vpop.eup %2558 }
 0xd6a   : > { %v2030_v59 = vmul.f32 %v2559_v44, %v2022_v53 }
 0xd6c   : > { %v2035_v60 = vmul.f32 %v2034_v57, %v2030_v59 }
 0xd6e   : > { %v2040_v61 = vadd.f32 %v2039_v58, %v2035_v60 }
 0xd70   : > { %2041 = vst.msk [vmem:[%s385_s30] sm:$0xff] %vm422_vm1, %v2040_v61 }
 0xd71 PF: > { %s18_s27 = sadd.s32 1, %s2567_s27  }
 0xd72   : > { %p15_p4 = scmp.ge.s32.totalorder %s18_s27, 4  }
 0xd74   :  { %17 = sbr.rel (!%p15_p4) target bundleno = 1 (0x1), region = 105 }

</bundles_post_ra>
